<compile_context>
chip_gen: v5e
topology: v5e:2x2
jax: 0.10.0
libtpu: 0.0.40
codegen_flags: <defaults>
</compile_context>

<pallas_src>
import functools

import jax
import jax.numpy as jnp
from jax.experimental import pallas as pl
from jax.experimental.pallas import tpu as pltpu


LANE = 128      # lane width  (last dim granularity)
SUBLANE = 8     # sublane width (second-to-last dim granularity, f32)


def _round_up(x, m):
    return (x + m - 1) // m * m


# -----------------------------------------------------------------------------
# Pallas kernel: fused fusion-head
#   combined = concat([text_feat, image_feat], dim=1)   (done in wrapper)
#   h        = relu(combined @ W1 + b1)                  (fc1 + ReLU)
#   h        = dropout(h)                                (p=0.3, identity: eval)
#   logits   = h @ W2 + b2                               (classifier)
#
# x_ref, w1_ref, w2_ref are bf16; biases and the accumulators/output are f32.
# -----------------------------------------------------------------------------
def fusion_head_kernel(x_ref, w1_ref, b1_ref, w2_ref, b2_ref, out_ref):
    # fc1: single K=1280 MXU pass, f32 accumulation.
    h = jnp.dot(x_ref[...], w1_ref[...], preferred_element_type=jnp.float32)
    h = jnp.maximum(h + b1_ref[...], 0.0)          # bias + ReLU
    # TODO(synk): dropout(p=0.3) is a no-op at inference; training mode would
    # need pltpu.prng_seed/prng_random_bits masking here.
    # classifier: lane-dense (H x 128) padded W2, f32 accumulation.
    logits = jnp.dot(h.astype(w2_ref.dtype), w2_ref[...],
                     preferred_element_type=jnp.float32)
    out_ref[...] = (logits + b2_ref[...]).astype(out_ref.dtype)


def multimodal_fusion_head(text_feat, img_feat, w1, b1, w2, b2, *,
                           batch_tile=256):
    """text_feat: [B, T_dim], img_feat: [B, I_dim],
       w1: [T_dim + I_dim, H], b1: [H], w2: [H, C], b2: [C] -> logits [B, C]"""
    B = text_feat.shape[0]
    K = w1.shape[0]                       # T_dim + I_dim (1280)
    H = w1.shape[1]                       # hidden (512)
    C = w2.shape[1]                       # num_classes (8)

    # --- wrapper-side prep (cheap relative to the weight DMA) -----------------
    # Concat once -> single K-pass matmul; cast activations/weights to bf16.
    x = jnp.concatenate([text_feat, img_feat], axis=1).astype(jnp.bfloat16)

    # Pad batch to a sublane multiple and pick a batch tile.
    B_min = _round_up(B, SUBLANE)
    tb = min(batch_tile, B_min)
    B_pad = _round_up(B_min, tb)
    if B_pad != B:
        x = jnp.pad(x, ((0, B_pad - B), (0, 0)))

    # Lane-dense output: zero-pad classifier to 128 columns.
    C_pad = _round_up(C, LANE)
    w2_p = jnp.pad(w2, ((0, 0), (0, C_pad - C))).astype(jnp.bfloat16)
    b2_p = jnp.pad(b2, (0, C_pad - C)).reshape(1, C_pad).astype(jnp.float32)

    w1_b = w1.astype(jnp.bfloat16)
    b1_b = b1.reshape(1, H).astype(jnp.float32)

    grid = (B_pad // tb,)

    cost = pl.CostEstimate(
        flops=2 * B_pad * K * H + 2 * B_pad * H * C_pad,
        transcendentals=0,
        bytes_accessed=(x.size * 2 + w1_b.size * 2 + w2_p.size * 2
                        + b1_b.size * 4 + b2_p.size * 4 + B_pad * C_pad * 4),
    )

    out_pad = pl.pallas_call(
        fusion_head_kernel,
        out_shape=jax.ShapeDtypeStruct((B_pad, C_pad), jnp.float32),
        grid_spec=pl.GridSpec(
            grid=grid,
            in_specs=[
                pl.BlockSpec((tb, K), lambda i: (i, 0)),      # activations
                pl.BlockSpec((K, H), lambda i: (0, 0)),       # W1 (resident)
                pl.BlockSpec((1, H), lambda i: (0, 0)),       # b1 (resident)
                pl.BlockSpec((H, C_pad), lambda i: (0, 0)),   # W2 (resident)
                pl.BlockSpec((1, C_pad), lambda i: (0, 0)),   # b2 (resident)
            ],
            out_specs=pl.BlockSpec((tb, C_pad), lambda i: (i, 0)),
        ),
        compiler_params=pltpu.CompilerParams(
            dimension_semantics=("parallel",)),   # shards batch tiles on v7x
        cost_estimate=cost,
    )(x, w1_b, b1_b, w2_p, b2_p)

    return out_pad[:B, :C]


# -----------------------------------------------------------------------------
# Deterministic stub encoders (glue, plain JAX).
# TODO(synk): the real TextEncoder (chinese-roberta-wwm-ext BERT) and
# ImageEncoder (pretrained ResNet50) are checkpoint-backed pretrained networks
# and are not reproducible from the module definition; they are replaced with
# deterministic linear stubs that produce features of the correct shape/dtype.
# -----------------------------------------------------------------------------
def stub_text_encoder(input_ids, attention_mask, w_txt):
    # masked mean "embedding" of token ids -> project to 768-d CLS-like feature
    ids = input_ids.astype(jnp.float32)
    mask = attention_mask.astype(jnp.float32)
    pooled = jnp.sum(ids * mask, axis=1, keepdims=True) / jnp.maximum(
        jnp.sum(mask, axis=1, keepdims=True), 1.0)                 # [B, 1]
    return pooled @ w_txt                                          # [B, 768]


def stub_image_encoder(images_nchw, w_img):
    # global average pool, done in NHWC so channels sit on the lane axis,
    # then project channels -> 512-d feature
    nhwc = jnp.transpose(images_nchw, (0, 2, 3, 1))                # [B,H,W,C]
    pooled = jnp.mean(nhwc, axis=(1, 2))                           # [B, C_in]
    return pooled @ w_img                                          # [B, 512]


# -----------------------------------------------------------------------------
# Full forward (matches MultimodalClassifier.forward signature, eval mode)
# -----------------------------------------------------------------------------
@functools.partial(jax.jit, static_argnums=())
def multimodal_classifier_forward(params, input_ids, attention_mask, images):
    text_features = stub_text_encoder(input_ids, attention_mask, params["w_txt"])
    image_features = stub_image_encoder(images, params["w_img"])
    return multimodal_fusion_head(
        text_features, image_features,
        params["fc1_w"], params["fc1_b"],
        params["cls_w"], params["cls_b"])


def init_params(key, text_output_dim=768, image_output_dim=512,
                hidden_dim=512, num_classes=8, image_channels=3):
    ks = jax.random.split(key, 6)
    scale = 0.02
    return {
        # stub encoder projections
        "w_txt": scale * jax.random.normal(ks[0], (1, text_output_dim), jnp.float32),
        "w_img": scale * jax.random.normal(ks[1], (image_channels, image_output_dim), jnp.float32),
        # fc1: (text_dim + image_dim) -> hidden
        "fc1_w": scale * jax.random.normal(
            ks[2], (text_output_dim + image_output_dim, hidden_dim), jnp.float32),
        "fc1_b": scale * jax.random.normal(ks[3], (hidden_dim,), jnp.float32),
        # classifier: hidden -> num_classes
        "cls_w": scale * jax.random.normal(ks[4], (hidden_dim, num_classes), jnp.float32),
        "cls_b": scale * jax.random.normal(ks[5], (num_classes,), jnp.float32),
    }


if __name__ == "__main__":
    key = jax.random.PRNGKey(0)
    k_param, k_ids, k_img = jax.random.split(key, 3)

    B, SEQ, C_IN, HW = 2, 8, 3, 32
    NUM_CLASSES = 8

    params = init_params(k_param, num_classes=NUM_CLASSES, image_channels=C_IN)

    input_ids = jax.random.randint(k_ids, (B, SEQ), 0, 1000, dtype=jnp.int32)
    attention_mask = jnp.ones((B, SEQ), dtype=jnp.int32)
    images = jax.random.normal(k_img, (B, C_IN, HW, HW), jnp.float32)   # NCHW

    logits = multimodal_classifier_forward(params, input_ids, attention_mask, images)
    logits = jax.block_until_ready(logits)
    assert logits.shape == (B, NUM_CLASSES)

    # --- correctness checks --------------------------------------------------
    t = stub_text_encoder(input_ids, attention_mask, params["w_txt"])
    i = stub_image_encoder(images, params["w_img"])
    combined = jnp.concatenate([t, i], axis=1)

    # (a) reference that mimics the kernel's bf16-weight / f32-accumulate math
    xb = combined.astype(jnp.bfloat16)
    w1b = params["fc1_w"].astype(jnp.bfloat16)
    w2b = params["cls_w"].astype(jnp.bfloat16)
    h_ref = jnp.maximum(
        jnp.dot(xb, w1b, preferred_element_type=jnp.float32) + params["fc1_b"], 0.0)
    ref_bf16 = jnp.dot(h_ref.astype(jnp.bfloat16), w2b,
                       preferred_element_type=jnp.float32) + params["cls_b"]
    assert jnp.allclose(logits, ref_bf16, atol=1e-2, rtol=1e-2)

    # (b) loose sanity check against the full-f32 module math
    h32 = jnp.maximum(combined @ params["fc1_w"] + params["fc1_b"], 0.0)
    ref_f32 = h32 @ params["cls_w"] + params["cls_b"]
    assert jnp.allclose(logits, ref_f32, atol=5e-1, rtol=1e-1)

    print("KERNEL_OK")
</pallas_src>

<mosaic_0001>
module attributes {stable_mosaic.version = 11 : i64} {
  func.func @fusion_head_kernel(%arg0: i32, %arg1: memref<8x1280xbf16, #tpu.memory_space<vmem>>, %arg2: memref<1280x512xbf16, #tpu.memory_space<vmem>>, %arg3: memref<1x512xf32, #tpu.memory_space<vmem>>, %arg4: memref<512x128xbf16, #tpu.memory_space<vmem>>, %arg5: memref<1x128xf32, #tpu.memory_space<vmem>>, %arg6: memref<8x128xf32, #tpu.memory_space<vmem>>) attributes {dimension_semantics = [#tpu.dimension_semantics<parallel>], iteration_bounds = array<i64: 1>, scalar_prefetch = 0 : i64, scratch_operands = 0 : i64, tpu.core_type = #tpu.core_type<tc>, window_params = [{transform_indices = @transform_0, window_bounds = array<i64: 8, 1280>}, {pipeline_mode = #tpu.pipeline_mode<synchronous>, transform_indices = @transform_1, window_bounds = array<i64: 1280, 512>}, {pipeline_mode = #tpu.pipeline_mode<synchronous>, transform_indices = @transform_2, window_bounds = array<i64: 1, 512>}, {pipeline_mode = #tpu.pipeline_mode<synchronous>, transform_indices = @transform_3, window_bounds = array<i64: 512, 128>}, {pipeline_mode = #tpu.pipeline_mode<synchronous>, transform_indices = @transform_4, window_bounds = array<i64: 1, 128>}, {transform_indices = @transform_5, window_bounds = array<i64: 8, 128>}]} {
    %c0 = arith.constant 0 : index
    %c0_0 = arith.constant 0 : index
    %0 = vector.load %arg1[%c0, %c0_0] : memref<8x1280xbf16, #tpu.memory_space<vmem>>, vector<8x1280xbf16>
    %c0_1 = arith.constant 0 : index
    %c0_2 = arith.constant 0 : index
    %1 = vector.load %arg2[%c0_1, %c0_2] : memref<1280x512xbf16, #tpu.memory_space<vmem>>, vector<1280x512xbf16>
    %cst = arith.constant dense<0.000000e+00> : vector<8x512xf32>
    %2 = tpu.matmul %0, %1, %cst {dimension_numbers = #tpu.dot_dimension_numbers<[1], [0], [0], [1], [0, 0, 1, 1], [], []>} : vector<8x1280xbf16>, vector<1280x512xbf16>, vector<8x512xf32> -> vector<8x512xf32>
    %c0_3 = arith.constant 0 : index
    %c0_4 = arith.constant 0 : index
    %3 = vector.load %arg3[%c0_3, %c0_4] : memref<1x512xf32, #tpu.memory_space<vmem>>, vector<1x512xf32>
    %4 = vector.broadcast %3 : vector<1x512xf32> to vector<8x512xf32>
    %5 = arith.addf %2, %4 : vector<8x512xf32>
    %cst_5 = arith.constant 0.000000e+00 : f32
    %6 = vector.broadcast %cst_5 : f32 to vector<8x512xf32>
    %7 = arith.maximumf %5, %6 : vector<8x512xf32>
    %8 = arith.truncf %7 : vector<8x512xf32> to vector<8x512xbf16>
    %c0_6 = arith.constant 0 : index
    %c0_7 = arith.constant 0 : index
    %9 = vector.load %arg4[%c0_6, %c0_7] : memref<512x128xbf16, #tpu.memory_space<vmem>>, vector<512x128xbf16>
    %cst_8 = arith.constant dense<0.000000e+00> : vector<8x128xf32>
    %10 = tpu.matmul %8, %9, %cst_8 {dimension_numbers = #tpu.dot_dimension_numbers<[1], [0], [0], [1], [0, 0, 1, 1], [], []>} : vector<8x512xbf16>, vector<512x128xbf16>, vector<8x128xf32> -> vector<8x128xf32>
    %c0_9 = arith.constant 0 : index
    %c0_10 = arith.constant 0 : index
    %11 = vector.load %arg5[%c0_9, %c0_10] : memref<1x128xf32, #tpu.memory_space<vmem>>, vector<1x128xf32>
    %12 = vector.broadcast %11 : vector<1x128xf32> to vector<8x128xf32>
    %13 = arith.addf %10, %12 : vector<8x128xf32>
    %c0_11 = arith.constant 0 : index
    %c0_12 = arith.constant 0 : index
    %14 = vector.load %arg6[%c0_11, %c0_12] : memref<8x128xf32, #tpu.memory_space<vmem>>, vector<8x128xf32>
    tpu.vector_store %arg6[%c0_11, %c0_12], %13 {strides = array<i32>} : memref<8x128xf32, #tpu.memory_space<vmem>>, vector<8x128xf32>,
    return
  }
  func.func @transform_0(%arg0: i32) -> (i32, i32) {
    %c0_i32 = arith.constant 0 : i32
    %c0_i32_0 = arith.constant 0 : i32
    return %arg0, %c0_i32 : i32, i32
  }
  func.func @transform_1(%arg0: i32) -> (i32, i32) {
    %c0_i32 = arith.constant 0 : i32
    %c0_i32_0 = arith.constant 0 : i32
    %c0_i32_1 = arith.constant 0 : i32
    return %c0_i32, %c0_i32_0 : i32, i32
  }
  func.func @transform_2(%arg0: i32) -> (i32, i32) {
    %c0_i32 = arith.constant 0 : i32
    %c0_i32_0 = arith.constant 0 : i32
    %c0_i32_1 = arith.constant 0 : i32
    return %c0_i32, %c0_i32_0 : i32, i32
  }
  func.func @transform_3(%arg0: i32) -> (i32, i32) {
    %c0_i32 = arith.constant 0 : i32
    %c0_i32_0 = arith.constant 0 : i32
    %c0_i32_1 = arith.constant 0 : i32
    return %c0_i32, %c0_i32_0 : i32, i32
  }
  func.func @transform_4(%arg0: i32) -> (i32, i32) {
    %c0_i32 = arith.constant 0 : i32
    %c0_i32_0 = arith.constant 0 : i32
    %c0_i32_1 = arith.constant 0 : i32
    return %c0_i32, %c0_i32_0 : i32, i32
  }
  func.func @transform_5(%arg0: i32) -> (i32, i32) {
    %c0_i32 = arith.constant 0 : i32
    %c0_i32_0 = arith.constant 0 : i32
    return %arg0, %c0_i32 : i32, i32
  }
}

</mosaic_0001>

<bundles_post_ra>
// kernel: multimodal_classifier_forward.1
= control target key start
LH: loop header
LB: loop body
LE: loop exit
PB: predicated region body
PF: predicated region fallthrough
CT: control target
= control target key end

     0   :  { %s6767_s1 = inlined_call_operand.vmem [shape: bf16[1280,512], index: 1, kind: input, shape index: {}]   ;;  %s6768_s0 = inlined_call_operand.vmem [shape: bf16[8,1280], index: 0, kind: input, shape index: {}]   ;;  %s6769_s2 = inlined_call_operand.vmem [shape: f32[1,512], index: 2, kind: input, shape index: {}]   ;;  %s6770_s3 = inlined_call_operand.vmem [shape: bf16[512,128], index: 3, kind: input, shape index: {}]   ;;  %s6771_s4 = inlined_call_operand.vmem [shape: f32[1,128], index: 4, kind: input, shape index: {}]   ;;  %s6772_s5 = inlined_call_operand.vmem [shape: f32[8,128], index: 5, kind: output, shape index: {}]  }
   0x1   :  { %v2949_v0 = vld [vmem:[%s6767_s1 + $0xe0] sm:$0xf]  ;;  %v4273_v1 = vld [vmem:[%s6767_s1 + $0xec] sm:$0xf0] }
   0x2   :  { %v3077_v2 = vld [vmem:[%s6767_s1 + $0x1e0] sm:$0xf]  ;;  %v2950_v3 = vor.u32 %v4273_v1, %v2949_v0  ;;  %v4305_v4 = vld [vmem:[%s6767_s1 + $0x1ec] sm:$0xf0] }
   0x3   :  { %v3205_v5 = vld [vmem:[%s6767_s1 + $0x2e0] sm:$0xf]  ;;  %v4337_v6 = vld [vmem:[%s6767_s1 + $0x2ec] sm:$0xf0]  ;;  %v3078_v7 = vor.u32 %v4305_v4, %v3077_v2 }
   0x4   :  { %v3206_v8 = vor.u32 %v4337_v6, %v3205_v5  ;;  %v3333_v9 = vld [vmem:[%s6767_s1 + $0x3e0] sm:$0xf]  ;;  %v4369_v10 = vld [vmem:[%s6767_s1 + $0x3ec] sm:$0xf0]  ;;  %1990 = vmatpush.bf16.msra.mxu0 %v2950_v3 }
   0x5   :  { %v2933_v11 = vld [vmem:[%s6767_s1 + $0xc0] sm:$0xf]  ;;  %v3334_v12 = vor.u32 %v4369_v10, %v3333_v9  ;;  %v4269_v13 = vld [vmem:[%s6767_s1 + $0xcc] sm:$0xf0]  ;;  %2003 = vmatpush.bf16.msra.mxu1 %v3078_v7 }
   0x6   :  { %v3061_v14 = vld [vmem:[%s6767_s1 + $0x1c0] sm:$0xf]  ;;  %v4301_v15 = vld [vmem:[%s6767_s1 + $0x1cc] sm:$0xf0]  ;;  %2016 = vmatpush.bf16.msra.mxu2 %v3206_v8  ;;  %v2934_v16 = vor.u32 %v4269_v13, %v2933_v11 }
   0x7   :  { %v3062_v17 = vor.u32 %v4301_v15, %v3061_v14  ;;  %v3189_v18 = vld [vmem:[%s6767_s1 + $0x2c0] sm:$0xf]  ;;  %v4333_v19 = vld [vmem:[%s6767_s1 + $0x2cc] sm:$0xf0]  ;;  %2029 = vmatpush.bf16.msra.mxu3 %v3334_v12 }
   0x8   :  { %v3317_v20 = vld [vmem:[%s6767_s1 + $0x3c0] sm:$0xf]  ;;  %v3190_v21 = vor.u32 %v4333_v19, %v3189_v18  ;;  %v4365_v22 = vld [vmem:[%s6767_s1 + $0x3cc] sm:$0xf0]  ;;  %1991 = vmatpush.bf16.msra.mxu0 %v2934_v16 }
   0x9   :  { %v2917_v23 = vld [vmem:[%s6767_s1 + $0xa0] sm:$0xf]  ;;  %v4265_v24 = vld [vmem:[%s6767_s1 + $0xac] sm:$0xf0]  ;;  %v3318_v25 = vor.u32 %v4365_v22, %v3317_v20  ;;  %2004 = vmatpush.bf16.msra.mxu1 %v3062_v17 }
   0xa   :  { %v3045_v26 = vld [vmem:[%s6767_s1 + $0x1a0] sm:$0xf]  ;;  %v4297_v27 = vld [vmem:[%s6767_s1 + $0x1ac] sm:$0xf0]  ;;  %v2918_v29 = vor.u32 %v4265_v24, %v2917_v23  ;;  %2017 = vmatpush.bf16.msra.mxu2 %v3190_v21 }
   0xb   :  { %v3173_v28 = vld [vmem:[%s6767_s1 + $0x2a0] sm:$0xf]  ;;  %v4329_v30 = vld [vmem:[%s6767_s1 + $0x2ac] sm:$0xf0]  ;;  %v3046_v33 = vor.u32 %v4297_v27, %v3045_v26  ;;  %2030 = vmatpush.bf16.msra.mxu3 %v3318_v25 }
   0xc   :  { %v3301_v31 = vld [vmem:[%s6767_s1 + $0x3a0] sm:$0xf]  ;;  %v4361_v32 = vld [vmem:[%s6767_s1 + $0x3ac] sm:$0xf0]  ;;  %v3174_v34 = vor.u32 %v4329_v30, %v3173_v28  ;;  %1992 = vmatpush.bf16.msra.mxu0 %v2918_v29 }
   0xd   :  { %v2901_v35 = vld [vmem:[%s6767_s1 + $0x80] sm:$0xf]  ;;  %v4261_v36 = vld [vmem:[%s6767_s1 + $0x8c] sm:$0xf0]  ;;  %v3302_v38 = vor.u32 %v4361_v32, %v3301_v31  ;;  %2005 = vmatpush.bf16.msra.mxu1 %v3046_v33 }
   0xe   :  { %v3029_v37 = vld [vmem:[%s6767_s1 + $0x180] sm:$0xf]  ;;  %v4293_v39 = vld [vmem:[%s6767_s1 + $0x18c] sm:$0xf0]  ;;  %v2902_v44 = vor.u32 %v4261_v36, %v2901_v35  ;;  %2018 = vmatpush.bf16.msra.mxu2 %v3174_v34 }
   0xf   :  { %v3157_v40 = vld [vmem:[%s6767_s1 + $0x280] sm:$0xf]  ;;  %v4325_v41 = vld [vmem:[%s6767_s1 + $0x28c] sm:$0xf0]  ;;  %v3030_v45 = vor.u32 %v4293_v39, %v3029_v37  ;;  %2031 = vmatpush.bf16.msra.mxu3 %v3302_v38 }
  0x10   :  { %v3285_v42 = vld [vmem:[%s6767_s1 + $0x380] sm:$0xf]  ;;  %v4357_v43 = vld [vmem:[%s6767_s1 + $0x38c] sm:$0xf0]  ;;  %v3158_v46 = vor.u32 %v4325_v41, %v3157_v40  ;;  %1993 = vmatpush.bf16.msra.mxu0 %v2902_v44 }
  0x11   :  { %v2885_v47 = vld [vmem:[%s6767_s1 + $0x60] sm:$0xf]  ;;  %v4257_v48 = vld [vmem:[%s6767_s1 + $0x6c] sm:$0xf0]  ;;  %v3286_v50 = vor.u32 %v4357_v43, %v3285_v42  ;;  %2006 = vmatpush.bf16.msra.mxu1 %v3030_v45 }
  0x12   :  { %v3013_v49 = vld [vmem:[%s6767_s1 + $0x160] sm:$0xf]  ;;  %v4289_v51 = vld [vmem:[%s6767_s1 + $0x16c] sm:$0xf0]  ;;  %v2886_v56 = vor.u32 %v4257_v48, %v2885_v47  ;;  %2019 = vmatpush.bf16.msra.mxu2 %v3158_v46 }
  0x13   :  { %v3141_v52 = vld [vmem:[%s6767_s1 + $0x260] sm:$0xf]  ;;  %v4321_v53 = vld [vmem:[%s6767_s1 + $0x26c] sm:$0xf0]  ;;  %v3014_v57 = vor.u32 %v4289_v51, %v3013_v49  ;;  %2032 = vmatpush.bf16.msra.mxu3 %v3286_v50 }
  0x14   :  { %v3269_v54 = vld [vmem:[%s6767_s1 + $0x360] sm:$0xf]  ;;  %v4353_v55 = vld [vmem:[%s6767_s1 + $0x36c] sm:$0xf0]  ;;  %v3142_v58 = vor.u32 %v4321_v53, %v3141_v52  ;;  %1994 = vmatpush.bf16.msra.mxu0 %v2886_v56 }
  0x15   :  { %v2869_v59 = vld [vmem:[%s6767_s1 + $0x40] sm:$0xf]  ;;  %v4253_v60 = vld [vmem:[%s6767_s1 + $0x4c] sm:$0xf0]  ;;  %v3270_v62 = vor.u32 %v4353_v55, %v3269_v54  ;;  %2007 = vmatpush.bf16.msra.mxu1 %v3014_v57 }
  0x16   :  { %v2997_v61 = vld [vmem:[%s6767_s1 + $0x140] sm:$0xf]  ;;  %v4285_v63 = vld [vmem:[%s6767_s1 + $0x14c] sm:$0xf0]  ;;  %v2870_v4 = vor.u32 %v4253_v60, %v2869_v59  ;;  %2020 = vmatpush.bf16.msra.mxu2 %v3142_v58 }
  0x17   :  { %v3125_v0 = vld [vmem:[%s6767_s1 + $0x240] sm:$0xf]  ;;  %v4317_v1 = vld [vmem:[%s6767_s1 + $0x24c] sm:$0xf0]  ;;  %v2998_v5 = vor.u32 %v4285_v63, %v2997_v61  ;;  %2033 = vmatpush.bf16.msra.mxu3 %v3270_v62 }
  0x18   :  { %v3253_v2 = vld [vmem:[%s6767_s1 + $0x340] sm:$0xf]  ;;  %v4349_v3 = vld [vmem:[%s6767_s1 + $0x34c] sm:$0xf0]  ;;  %v3126_v6 = vor.u32 %v4317_v1, %v3125_v0  ;;  %1995 = vmatpush.bf16.msra.mxu0 %v2870_v4 }
  0x19   :  { %v2853_v7 = vld [vmem:[%s6767_s1 + $0x20] sm:$0xf]  ;;  %v4249_v8 = vld [vmem:[%s6767_s1 + $0x2c] sm:$0xf0]  ;;  %v3254_v10 = vor.u32 %v4349_v3, %v3253_v2  ;;  %2008 = vmatpush.bf16.msra.mxu1 %v2998_v5  ;;  %v21_v2 = vld [vmem:[%s6768_s0 + $0x8] sm:$0xff] }
  0x1a   :  { %v2981_v9 = vld [vmem:[%s6767_s1 + $0x120] sm:$0xf]  ;;  %v4281_v11 = vld [vmem:[%s6767_s1 + $0x12c] sm:$0xf0]  ;;  %v2854_v16 = vor.u32 %v4249_v8, %v2853_v7  ;;  %2021 = vmatpush.bf16.msra.mxu2 %v3126_v6  ;;  %v362_v8 = vunpack.c.l.b16 %v21_v2 }
  0x1b   :  { %v3109_v12 = vld [vmem:[%s6767_s1 + $0x220] sm:$0xf]  ;;  %v4313_v13 = vld [vmem:[%s6767_s1 + $0x22c] sm:$0xf0]  ;;  %v2982_v19 = vor.u32 %v4281_v11, %v2981_v9  ;;  %2034 = vmatpush.bf16.msra.mxu3 %v3254_v10  ;;  %v363_v10 = vunpack.c.h.b16 %v21_v2 }
  0x1c   :  { %v3237_v14 = vld [vmem:[%s6767_s1 + $0x320] sm:$0xf]  ;;  %v4345_v15 = vld [vmem:[%s6767_s1 + $0x32c] sm:$0xf0]  ;;  %v3110_v20 = vor.u32 %v4313_v13, %v3109_v12  ;;  %1996 = vmatpush.bf16.msra.mxu0 %v2854_v16 }
  0x1d   :  { %v2837_v17 = vld [vmem:[%s6767_s1] sm:$0xf]  ;;  %v4245_v18 = vld [vmem:[%s6767_s1 + $0xc] sm:$0xf0]  ;;  %v3238_v24 = vor.u32 %v4345_v15, %v3237_v14  ;;  %2009 = vmatpush.bf16.msra.mxu1 %v2982_v19 }
  0x1e   :  { %v2965_v21 = vld [vmem:[%s6767_s1 + $0x100] sm:$0xf]  ;;  %v4277_v22 = vld [vmem:[%s6767_s1 + $0x10c] sm:$0xf0]  ;;  %v2838_v31 = vor.u32 %v4245_v18, %v2837_v17  ;;  %2022 = vmatpush.bf16.msra.mxu2 %v3110_v20  ;;  %v4921_v18 = vpack.c.b16 %v362_v8, %v362_v8  ;;  %v4925_v20 = vpack.c.b16 %v363_v10, %v363_v10 }
  0x1f   :  { %v3093_v23 = vld [vmem:[%s6767_s1 + $0x200] sm:$0xf]  ;;  %v4309_v25 = vld [vmem:[%s6767_s1 + $0x20c] sm:$0xf0]  ;;  %v2966_v35 = vor.u32 %v4277_v22, %v2965_v21  ;;  %2035 = vmatpush.bf16.msra.mxu3 %v3238_v24 }
  0x20   :  { %v3221_v26 = vld [vmem:[%s6767_s1 + $0x300] sm:$0xf]  ;;  %v4341_v27 = vld [vmem:[%s6767_s1 + $0x30c] sm:$0xf0]  ;;  %v3094_v36 = vor.u32 %v4309_v25, %v3093_v23  ;;  %1997 = vmatpush.bf16.msra.mxu0 %v2838_v31 }
  0x21   :  { %v3461_v28 = vld [vmem:[%s6767_s1 + $0x4e0] sm:$0xf]  ;;  %v4401_v29 = vld [vmem:[%s6767_s1 + $0x4ec] sm:$0xf0]  ;;  %v3222_v39 = vor.u32 %v4341_v27, %v3221_v26  ;;  %2010 = vmatpush.bf16.msra.mxu1 %v2966_v35 }
  0x22   :  { %v3589_v30 = vld [vmem:[%s6767_s1 + $0x5e0] sm:$0xf]  ;;  %v4433_v32 = vld [vmem:[%s6767_s1 + $0x5ec] sm:$0xf0]  ;;  %v3462_v40 = vor.u32 %v4401_v29, %v3461_v28  ;;  %2023 = vmatpush.bf16.msra.mxu2 %v3094_v36 }
  0x23   :  { %v3717_v33 = vld [vmem:[%s6767_s1 + $0x6e0] sm:$0xf]  ;;  %v4465_v34 = vld [vmem:[%s6767_s1 + $0x6ec] sm:$0xf0]  ;;  %v3590_v41 = vor.u32 %v4433_v32, %v3589_v30  ;;  %2036 = vmatpush.bf16.msra.mxu3 %v3222_v39 }
  0x24   :  { %v3845_v37 = vld [vmem:[%s6767_s1 + $0x7e0] sm:$0xf]  ;;  %v4497_v38 = vld [vmem:[%s6767_s1 + $0x7ec] sm:$0xf0]  ;;  %v3718_v42 = vor.u32 %v4465_v34, %v3717_v33  ;;  %2042 = vmatpush.bf16.msrb.mxu0 %v3462_v40 }
  0x25   :  { %v3445_v43 = vld [vmem:[%s6767_s1 + $0x4c0] sm:$0xf]  ;;  %v4397_v44 = vld [vmem:[%s6767_s1 + $0x4cc] sm:$0xf0]  ;;  %v3846_v46 = vor.u32 %v4497_v38, %v3845_v37  ;;  %2055 = vmatpush.bf16.msrb.mxu1 %v3590_v41  ;;  %2024 = vmatmul.bf16.vlgmr.msra.gmra.mxu2 %v4921_v18 }
  0x26   :  { %v3573_v45 = vld [vmem:[%s6767_s1 + $0x5c0] sm:$0xf]  ;;  %v4429_v47 = vld [vmem:[%s6767_s1 + $0x5cc] sm:$0xf0]  ;;  %v3446_v52 = vor.u32 %v4397_v44, %v3445_v43  ;;  %2068 = vmatpush.bf16.msrb.mxu2 %v3718_v42  ;;  %2037 = vmatmul.bf16.vlgmr.msra.gmra.mxu3 %v4925_v20 }
  0x27   :  { %v3701_v48 = vld [vmem:[%s6767_s1 + $0x6c0] sm:$0xf]  ;;  %v4461_v49 = vld [vmem:[%s6767_s1 + $0x6cc] sm:$0xf0]  ;;  %v3574_v54 = vor.u32 %v4429_v47, %v3573_v45  ;;  %2081 = vmatpush.bf16.msrb.mxu3 %v3846_v46 }
  0x28   :  { %v3829_v50 = vld [vmem:[%s6767_s1 + $0x7c0] sm:$0xf]  ;;  %v4493_v51 = vld [vmem:[%s6767_s1 + $0x7cc] sm:$0xf0]  ;;  %v3702_v55 = vor.u32 %v4461_v49, %v3701_v48  ;;  %2043 = vmatpush.bf16.msrb.mxu0 %v3446_v52 }
  0x29   :  { %v3429_v53 = vld [vmem:[%s6767_s1 + $0x4a0] sm:$0xf]  ;;  %v4393_v56 = vld [vmem:[%s6767_s1 + $0x4ac] sm:$0xf0]  ;;  %v3830_v59 = vor.u32 %v4493_v51, %v3829_v50  ;;  %2056 = vmatpush.bf16.msrb.mxu1 %v3574_v54 }
  0x2a   :  { %v3557_v57 = vld [vmem:[%s6767_s1 + $0x5a0] sm:$0xf]  ;;  %v4425_v58 = vld [vmem:[%s6767_s1 + $0x5ac] sm:$0xf0]  ;;  %v3430_v0 = vor.u32 %v4393_v56, %v3429_v53  ;;  %2069 = vmatpush.bf16.msrb.mxu2 %v3702_v55 }
  0x2b   :  { %v3685_v60 = vld [vmem:[%s6767_s1 + $0x6a0] sm:$0xf]  ;;  %v4457_v61 = vld [vmem:[%s6767_s1 + $0x6ac] sm:$0xf0]  ;;  %v3558_v1 = vor.u32 %v4425_v58, %v3557_v57  ;;  %2082 = vmatpush.bf16.msrb.mxu3 %v3830_v59 }
  0x2c   :  { %v3813_v62 = vld [vmem:[%s6767_s1 + $0x7a0] sm:$0xf]  ;;  %v4489_v63 = vld [vmem:[%s6767_s1 + $0x7ac] sm:$0xf0]  ;;  %v3686_v4 = vor.u32 %v4457_v61, %v3685_v60  ;;  %2044 = vmatpush.bf16.msrb.mxu0 %v3430_v0 }
  0x2d   :  { %v20_v3 = vld [vmem:[%s6768_s0] sm:$0xff]  ;;  %v4389_v6 = vld [vmem:[%s6767_s1 + $0x48c] sm:$0xf0]  ;;  %v3814_v11 = vor.u32 %v4489_v63, %v3813_v62  ;;  %2057 = vmatpush.bf16.msrb.mxu1 %v3558_v1 }
  0x2e   :  { %v3413_v5 = vld [vmem:[%s6767_s1 + $0x480] sm:$0xf]  ;;  %v360_v9 = vunpack.c.l.b16 %v20_v3  ;;  %v4421_v12 = vld [vmem:[%s6767_s1 + $0x58c] sm:$0xf0]  ;;  %v361_v15 = vunpack.c.h.b16 %v20_v3  ;;  %2070 = vmatpush.bf16.msrb.mxu2 %v3686_v4  ;;  %v23_v3 = vld [vmem:[%s6768_s0 + $0x18] sm:$0xff] }
  0x2f   :  { %v3541_v7 = vld [vmem:[%s6767_s1 + $0x580] sm:$0xf]  ;;  %v4453_v14 = vld [vmem:[%s6767_s1 + $0x68c] sm:$0xf0]  ;;  %v3414_v21 = vor.u32 %v4389_v6, %v3413_v5  ;;  %2083 = vmatpush.bf16.msrb.mxu3 %v3814_v11 }
  0x30   :  { %v3669_v13 = vld [vmem:[%s6767_s1 + $0x680] sm:$0xf]  ;;  %v4485_v17 = vld [vmem:[%s6767_s1 + $0x78c] sm:$0xf0]  ;;  %v4923_v19 = vpack.c.b16 %v360_v9, %v360_v9  ;;  %v4927_v22 = vpack.c.b16 %v361_v15, %v361_v15  ;;  %v3542_v23 = vor.u32 %v4421_v12, %v3541_v7  ;;  %v366_v15 = vunpack.c.l.b16 %v23_v3 }
  0x31   :  { %v3797_v16 = vld [vmem:[%s6767_s1 + $0x780] sm:$0xf]  ;;  %v3670_v24 = vor.u32 %v4453_v14, %v3669_v13  ;;  %v4385_v26 = vld [vmem:[%s6767_s1 + $0x46c] sm:$0xf0]  ;;  %2045 = vmatpush.bf16.msrb.mxu0 %v3414_v21  ;;  %v4271_v13 = vld [vmem:[%s6767_s1 + $0xe4] sm:$0xf] }
  0x32   :  { %v3397_v25 = vld [vmem:[%s6767_s1 + $0x460] sm:$0xf]  ;;  %v3798_v28 = vor.u32 %v4485_v17, %v3797_v16  ;;  %v4417_v29 = vld [vmem:[%s6767_s1 + $0x56c] sm:$0xf0]  ;;  %1998 = vmatmul.bf16.vlgmr.msra.gmra.mxu0 %v4923_v19  ;;  %2011 = vmatmul.bf16.vlgmr.msra.gmra.mxu1 %v4927_v22  ;;  %v2951_v14 = vld [vmem:[%s6767_s1 + $0xf0] sm:$0xf0] }
  0x33   :  { %v3525_v27 = vld [vmem:[%s6767_s1 + $0x560] sm:$0xf]  ;;  %v4449_v31 = vld [vmem:[%s6767_s1 + $0x66c] sm:$0xf0]  ;;  %v3398_v34 = vor.u32 %v4385_v26, %v3397_v25  ;;  %2058 = vmatpush.bf16.msrb.mxu1 %v3542_v23  ;;  %2071 = vmatpush.bf16.msrb.mxu2 %v3670_v24  ;;  %v4303_v21 = vld [vmem:[%s6767_s1 + $0x1e4] sm:$0xf]  ;;  %v367_v25 = vunpack.c.h.b16 %v23_v3 }
  0x34   :  { %v3653_v30 = vld [vmem:[%s6767_s1 + $0x660] sm:$0xf]  ;;  %v4481_v33 = vld [vmem:[%s6767_s1 + $0x76c] sm:$0xf0]  ;;  %v3526_v35 = vor.u32 %v4417_v29, %v3525_v27  ;;  %2084 = vmatpush.bf16.msrb.mxu3 %v3798_v28  ;;  %v3079_v23 = vld [vmem:[%s6767_s1 + $0x1f0] sm:$0xf0] }
  0x35   :  { %v3781_v32 = vld [vmem:[%s6767_s1 + $0x760] sm:$0xf]  ;;  %v3654_v36 = vor.u32 %v4449_v31, %v3653_v30  ;;  %v4381_v38 = vld [vmem:[%s6767_s1 + $0x44c] sm:$0xf0]  ;;  %2046 = vmatpush.bf16.msrb.mxu0 %v3398_v34  ;;  %v2954_v30 = vor.u32 %v4271_v13, %v2951_v14  ;;  %v3082_v34 = vor.u32 %v4303_v21, %v3079_v23  ;;  %v3031_v3 = vld [vmem:[%s6767_s1 + $0x190] sm:$0xf0] }
  0x36   :  { %v3381_v37 = vld [vmem:[%s6767_s1 + $0x440] sm:$0xf]  ;;  %v3782_v40 = vor.u32 %v4481_v33, %v3781_v32  ;;  %v4413_v41 = vld [vmem:[%s6767_s1 + $0x54c] sm:$0xf0]  ;;  %v2887_v13 = vld [vmem:[%s6767_s1 + $0x70] sm:$0xf0] }
  0x37   :  { %v3509_v39 = vld [vmem:[%s6767_s1 + $0x540] sm:$0xf]  ;;  %v4445_v43 = vld [vmem:[%s6767_s1 + $0x64c] sm:$0xf0]  ;;  %v3382_v46 = vor.u32 %v4381_v38, %v3381_v37  ;;  %2059 = vmatpush.bf16.msrb.mxu1 %v3526_v35  ;;  %2072 = vmatpush.bf16.msrb.mxu2 %v3654_v36  ;;  %v4267_v36 = vld [vmem:[%s6767_s1 + $0xc4] sm:$0xf]  ;;  %v5077_v38 = vpack.c.b16 %v366_v15, %v366_v15 }
  0x38   :  { %v3637_v42 = vld [vmem:[%s6767_s1 + $0x640] sm:$0xf]  ;;  %v4477_v45 = vld [vmem:[%s6767_s1 + $0x74c] sm:$0xf0]  ;;  %v3510_v47 = vor.u32 %v4413_v41, %v3509_v39  ;;  %2085 = vmatpush.bf16.msrb.mxu3 %v3782_v40  ;;  %v2935_v37 = vld [vmem:[%s6767_s1 + $0xd0] sm:$0xf0] }
  0x39   :  { %v3765_v44 = vld [vmem:[%s6767_s1 + $0x740] sm:$0xf]  ;;  %v3638_v48 = vor.u32 %v4445_v43, %v3637_v42  ;;  %v4377_v50 = vld [vmem:[%s6767_s1 + $0x42c] sm:$0xf0]  ;;  %2047 = vmatpush.bf16.msrb.mxu0 %v3382_v46  ;;  %v4299_v39 = vld [vmem:[%s6767_s1 + $0x1c4] sm:$0xf]  ;;  %v5087_v42 = vpack.c.b16 %v367_v25, %v367_v25  ;;  %v2938_v46 = vor.u32 %v4267_v36, %v2935_v37 }
  0x3a   :  { %v3365_v49 = vld [vmem:[%s6767_s1 + $0x420] sm:$0xf]  ;;  %v3766_v52 = vor.u32 %v4477_v45, %v3765_v44  ;;  %v4409_v53 = vld [vmem:[%s6767_s1 + $0x52c] sm:$0xf0]  ;;  %v3063_v40 = vld [vmem:[%s6767_s1 + $0x1d0] sm:$0xf0] }
  0x3b   :  { %v3493_v51 = vld [vmem:[%s6767_s1 + $0x520] sm:$0xf]  ;;  %v4441_v55 = vld [vmem:[%s6767_s1 + $0x62c] sm:$0xf0]  ;;  %v3366_v59 = vor.u32 %v4377_v50, %v3365_v49  ;;  %2060 = vmatpush.bf16.msrb.mxu1 %v3510_v47  ;;  %2073 = vmatpush.bf16.msrb.mxu2 %v3638_v48  ;;  %v3066_v50 = vor.u32 %v4299_v39, %v3063_v40  ;;  %v4287_v14 = vld [vmem:[%s6767_s1 + $0x164] sm:$0xf] }
  0x3c   :  { %v3621_v54 = vld [vmem:[%s6767_s1 + $0x620] sm:$0xf]  ;;  %v4473_v57 = vld [vmem:[%s6767_s1 + $0x72c] sm:$0xf0]  ;;  %v3494_v63 = vor.u32 %v4409_v53, %v3493_v51  ;;  %2086 = vmatpush.bf16.msrb.mxu3 %v3766_v52  ;;  %v4263_v52 = vld [vmem:[%s6767_s1 + $0xa4] sm:$0xf] }
  0x3d   :  { %v3749_v56 = vld [vmem:[%s6767_s1 + $0x720] sm:$0xf]  ;;  %v4373_v60 = vld [vmem:[%s6767_s1 + $0x40c] sm:$0xf0]  ;;  %v3622_v0 = vor.u32 %v4441_v55, %v3621_v54  ;;  %2048 = vmatpush.bf16.msrb.mxu0 %v3366_v59  ;;  %v2919_v53 = vld [vmem:[%s6767_s1 + $0xb0] sm:$0xf0] }
  0x3e   :  { %v3349_v58 = vld [vmem:[%s6767_s1 + $0x400] sm:$0xf]  ;;  %v4405_v62 = vld [vmem:[%s6767_s1 + $0x50c] sm:$0xf0]  ;;  %v3750_v4 = vor.u32 %v4473_v57, %v3749_v56  ;;  %v4295_v54 = vld [vmem:[%s6767_s1 + $0x1a4] sm:$0xf] }
  0x3f   :  { %v3477_v61 = vld [vmem:[%s6767_s1 + $0x500] sm:$0xf]  ;;  %v4437_v2 = vld [vmem:[%s6767_s1 + $0x60c] sm:$0xf0]  ;;  %v3350_v11 = vor.u32 %v4373_v60, %v3349_v58  ;;  %2061 = vmatpush.bf16.msrb.mxu1 %v3494_v63  ;;  %2074 = vmatpush.bf16.msrb.mxu2 %v3622_v0  ;;  %v3047_v55 = vld [vmem:[%s6767_s1 + $0x1b0] sm:$0xf0]  ;;  %v2922_v58 = vor.u32 %v4263_v52, %v2919_v53 }
  0x40   :  { %v3605_v1 = vld [vmem:[%s6767_s1 + $0x600] sm:$0xf]  ;;  %v4469_v6 = vld [vmem:[%s6767_s1 + $0x70c] sm:$0xf0]  ;;  %v3478_v16 = vor.u32 %v4405_v62, %v3477_v61  ;;  %2087 = vmatpush.bf16.msrb.mxu3 %v3750_v4  ;;  %v3050_v62 = vor.u32 %v4295_v54, %v3047_v55  ;;  %v4259_v0 = vld [vmem:[%s6767_s1 + $0x84] sm:$0xf] }
  0x41   :  { %v3733_v5 = vld [vmem:[%s6767_s1 + $0x700] sm:$0xf]  ;;  %v22_v7 = vld [vmem:[%s6768_s0 + $0x10] sm:$0xff]  ;;  %v3606_v17 = vor.u32 %v4437_v2, %v3605_v1  ;;  %2049 = vmatpush.bf16.msrb.mxu0 %v3350_v11  ;;  %v4291_v2 = vld [vmem:[%s6767_s1 + $0x184] sm:$0xf] }
  0x42   :  { %v3973_v8 = vld [vmem:[%s6767_s1 + $0x8e0] sm:$0xf]  ;;  %v4529_v9 = vld [vmem:[%s6767_s1 + $0x8ec] sm:$0xf0]  ;;  %v364_v24 = vunpack.c.l.b16 %v22_v7  ;;  %v3734_v26 = vor.u32 %v4469_v6, %v3733_v5  ;;  %v365_v28 = vunpack.c.h.b16 %v22_v7  ;;  %v2903_v1 = vld [vmem:[%s6767_s1 + $0x90] sm:$0xf0] }
  0x43   :  { %v4101_v10 = vld [vmem:[%s6767_s1 + $0x9e0] sm:$0xf]  ;;  %v4561_v12 = vld [vmem:[%s6767_s1 + $0x9ec] sm:$0xf0]  ;;  %v3974_v27 = vor.u32 %v4529_v9, %v3973_v8  ;;  %2062 = vmatpush.bf16.msrb.mxu1 %v3478_v16  ;;  %2075 = vmatpush.bf16.msrb.mxu2 %v3606_v17  ;;  %v2906_v6 = vor.u32 %v4259_v0, %v2903_v1  ;;  %v3015_v15 = vld [vmem:[%s6767_s1 + $0x170] sm:$0xf0] }
  0x44   :  { %v4102_v29 = vor.u32 %v4561_v12, %v4101_v10  ;;  %v3957_v31 = vld [vmem:[%s6767_s1 + $0x8c0] sm:$0xf]  ;;  %v4525_v32 = vld [vmem:[%s6767_s1 + $0x8cc] sm:$0xf0]  ;;  %v5085_v41 = vpack.c.b16 %v364_v24, %v364_v24  ;;  %2088 = vmatpush.bf16.msrb.mxu3 %v3734_v26  ;;  %v5089_v44 = vpack.c.b16 %v365_v28, %v365_v28  ;;  %v3034_v10 = vor.u32 %v4291_v2, %v3031_v3  ;;  %v4255_v12 = vld [vmem:[%s6767_s1 + $0x64] sm:$0xf] }
  0x45   :  { %v4085_v33 = vld [vmem:[%s6767_s1 + $0x9c0] sm:$0xf]  ;;  %v4557_v35 = vld [vmem:[%s6767_s1 + $0x9cc] sm:$0xf0]  ;;  %2094 = vmatpush.bf16.msra.mxu0 %v3974_v27  ;;  %v3958_v43 = vor.u32 %v4525_v32, %v3957_v31  ;;  %v2890_v21 = vor.u32 %v4255_v12, %v2887_v13  ;;  %v3018_v26 = vor.u32 %v4287_v14, %v3015_v15  ;;  %v4251_v28 = vld [vmem:[%s6767_s1 + $0x44] sm:$0xf] }
  0x46   :  { %v4086_v45 = vor.u32 %v4557_v35, %v4085_v33  ;;  %v3941_v47 = vld [vmem:[%s6767_s1 + $0x8a0] sm:$0xf]  ;;  %v4521_v48 = vld [vmem:[%s6767_s1 + $0x8ac] sm:$0xf0]  ;;  %2076 = vmatmul.bf16.vlgmr.msrb.gmra.mxu2 %v5077_v38  ;;  %2050 = vmatmul.bf16.vlgmr.msrb.gmra.mxu0 %v5085_v41  ;;  %v2999_v31 = vld [vmem:[%s6767_s1 + $0x150] sm:$0xf0] }
  0x47   :  { %2107 = vmatpush.bf16.msra.mxu1 %v4102_v29  ;;  %2120 = vmatpush.bf16.msra.mxu2 %v2954_v30  ;;  %v4069_v49 = vld [vmem:[%s6767_s1 + $0x9a0] sm:$0xf]  ;;  %v4553_v51 = vld [vmem:[%s6767_s1 + $0x9ac] sm:$0xf0]  ;;  %v3942_v56 = vor.u32 %v4521_v48, %v3941_v47  ;;  %v2871_v29 = vld [vmem:[%s6767_s1 + $0x50] sm:$0xf0] }
  0x48   :  { %2133 = vmatpush.bf16.msra.mxu3 %v3082_v34  ;;  %2063 = vmatmul.bf16.vlgmr.msrb.gmra.mxu1 %v5089_v44  ;;  %v4070_v57 = vor.u32 %v4553_v51, %v4069_v49  ;;  %v3925_v59 = vld [vmem:[%s6767_s1 + $0x880] sm:$0xf]  ;;  %v4517_v60 = vld [vmem:[%s6767_s1 + $0x88c] sm:$0xf0]  ;;  %v4283_v30 = vld [vmem:[%s6767_s1 + $0x144] sm:$0xf]  ;;  %v2874_v34 = vor.u32 %v4251_v28, %v2871_v29 }
  0x49   :  { %2089 = vmatmul.bf16.vlgmr.msrb.gmra.mxu3 %v5087_v42  ;;  %2095 = vmatpush.bf16.msra.mxu0 %v3958_v43  ;;  %v4053_v61 = vld [vmem:[%s6767_s1 + $0x980] sm:$0xf]  ;;  %v4549_v63 = vld [vmem:[%s6767_s1 + $0x98c] sm:$0xf0]  ;;  %v3926_v4 = vor.u32 %v4517_v60, %v3925_v59  ;;  %v3002_v39 = vor.u32 %v4283_v30, %v2999_v31  ;;  %v4247_v43 = vld [vmem:[%s6767_s1 + $0x24] sm:$0xf] }
  0x4a   :  { %v4054_v5 = vor.u32 %v4549_v63, %v4053_v61  ;;  %v3909_v7 = vld [vmem:[%s6767_s1 + $0x860] sm:$0xf]  ;;  %v4513_v8 = vld [vmem:[%s6767_s1 + $0x86c] sm:$0xf0]  ;;  %v2983_v47 = vld [vmem:[%s6767_s1 + $0x130] sm:$0xf0] }
  0x4b   :  { %2108 = vmatpush.bf16.msra.mxu1 %v4086_v45  ;;  %2121 = vmatpush.bf16.msra.mxu2 %v2938_v46  ;;  %v4037_v9 = vld [vmem:[%s6767_s1 + $0x960] sm:$0xf]  ;;  %v4545_v11 = vld [vmem:[%s6767_s1 + $0x96c] sm:$0xf0]  ;;  %v3910_v16 = vor.u32 %v4513_v8, %v3909_v7  ;;  %v2855_v45 = vld [vmem:[%s6767_s1 + $0x30] sm:$0xf0] }
  0x4c   :  { %2134 = vmatpush.bf16.msra.mxu3 %v3066_v50  ;;  %v4038_v17 = vor.u32 %v4545_v11, %v4037_v9  ;;  %v3893_v23 = vld [vmem:[%s6767_s1 + $0x840] sm:$0xf]  ;;  %v4509_v24 = vld [vmem:[%s6767_s1 + $0x84c] sm:$0xf0]  ;;  %v4279_v46 = vld [vmem:[%s6767_s1 + $0x124] sm:$0xf]  ;;  %v2858_v53 = vor.u32 %v4247_v43, %v2855_v45 }
  0x4d   :  { %2096 = vmatpush.bf16.msra.mxu0 %v3942_v56  ;;  %v4021_v25 = vld [vmem:[%s6767_s1 + $0x940] sm:$0xf]  ;;  %v4541_v27 = vld [vmem:[%s6767_s1 + $0x94c] sm:$0xf0]  ;;  %v3894_v32 = vor.u32 %v4509_v24, %v3893_v23  ;;  %v4243_v55 = vld [vmem:[%s6767_s1 + $0x4] sm:$0xf] }
  0x4e   :  { %v4022_v33 = vor.u32 %v4541_v27, %v4021_v25  ;;  %v3877_v35 = vld [vmem:[%s6767_s1 + $0x820] sm:$0xf]  ;;  %v4505_v36 = vld [vmem:[%s6767_s1 + $0x82c] sm:$0xf0]  ;;  %v4275_v59 = vld [vmem:[%s6767_s1 + $0x104] sm:$0xf] }
  0x4f   :  { %2109 = vmatpush.bf16.msra.mxu1 %v4070_v57  ;;  %2122 = vmatpush.bf16.msra.mxu2 %v2922_v58  ;;  %v4005_v37 = vld [vmem:[%s6767_s1 + $0x920] sm:$0xf]  ;;  %v4537_v40 = vld [vmem:[%s6767_s1 + $0x92c] sm:$0xf0]  ;;  %v3878_v48 = vor.u32 %v4505_v36, %v3877_v35  ;;  %v2986_v57 = vor.u32 %v4279_v46, %v2983_v47  ;;  %v2839_v58 = vld [vmem:[%s6767_s1 + $0x10] sm:$0xf0] }
  0x50   :  { %2135 = vmatpush.bf16.msra.mxu3 %v3050_v62  ;;  %v3861_v49 = vld [vmem:[%s6767_s1 + $0x800] sm:$0xf]  ;;  %v4501_v50 = vld [vmem:[%s6767_s1 + $0x80c] sm:$0xf0]  ;;  %v4006_v52 = vor.u32 %v4537_v40, %v4005_v37  ;;  %v2967_v60 = vld [vmem:[%s6767_s1 + $0x110] sm:$0xf0] }
  0x51   :  { %2097 = vmatpush.bf16.msra.mxu0 %v3926_v4  ;;  %v3989_v51 = vld [vmem:[%s6767_s1 + $0x900] sm:$0xf]  ;;  %v4533_v54 = vld [vmem:[%s6767_s1 + $0x90c] sm:$0xf0]  ;;  %v4335_v61 = vld [vmem:[%s6767_s1 + $0x2e4] sm:$0xf]  ;;  %v3862_v0 = vor.u32 %v4501_v50, %v3861_v49 }
  0x52   :  { %v24_v56 = vld [vmem:[%s6768_s0 + $0x20] sm:$0xff]  ;;  %v3207_v62 = vld [vmem:[%s6767_s1 + $0x2f0] sm:$0xf0] }
  0x53   :  { %2110 = vmatpush.bf16.msra.mxu1 %v4054_v5  ;;  %2123 = vmatpush.bf16.msra.mxu2 %v2906_v6  ;;  %v4367_v63 = vld [vmem:[%s6767_s1 + $0x3e4] sm:$0xf]  ;;  %v3335_v1 = vld [vmem:[%s6767_s1 + $0x3f0] sm:$0xf0]  ;;  %v368_v4 = vunpack.c.l.b16 %v24_v56  ;;  %v3990_v5 = vor.u32 %v4533_v54, %v3989_v51  ;;  %v2842_v6 = vor.u32 %v4243_v55, %v2839_v58  ;;  %v369_v9 = vunpack.c.h.b16 %v24_v56 }
  0x54   :  { %2136 = vmatpush.bf16.msra.mxu3 %v3034_v10  ;;  %v4399_v2 = vld [vmem:[%s6767_s1 + $0x4e4] sm:$0xf]  ;;  %v3463_v3 = vld [vmem:[%s6767_s1 + $0x4f0] sm:$0xf0]  ;;  %v2970_v10 = vor.u32 %v4275_v59, %v2967_v60  ;;  %v3210_v11 = vor.u32 %v4335_v61, %v3207_v62  ;;  %v3338_v12 = vor.u32 %v4367_v63, %v3335_v1 }
  0x55   :  { %2098 = vmatpush.bf16.msra.mxu0 %v3910_v16  ;;  %v4431_v7 = vld [vmem:[%s6767_s1 + $0x5e4] sm:$0xf]  ;;  %v3591_v8 = vld [vmem:[%s6767_s1 + $0x5f0] sm:$0xf0]  ;;  %v3466_v13 = vor.u32 %v4399_v2, %v3463_v3 }
  0x56   :  { %v4331_v14 = vld [vmem:[%s6767_s1 + $0x2c4] sm:$0xf]  ;;  %v3191_v15 = vld [vmem:[%s6767_s1 + $0x2d0] sm:$0xf0] }
  0x57   :  { %2111 = vmatpush.bf16.msra.mxu1 %v4038_v17  ;;  %2124 = vmatpush.bf16.msra.mxu2 %v2890_v21  ;;  %v4363_v16 = vld [vmem:[%s6767_s1 + $0x3c4] sm:$0xf]  ;;  %v3594_v17 = vor.u32 %v4431_v7, %v3591_v8  ;;  %v5275_v21 = vpack.c.b16 %v368_v4, %v368_v4  ;;  %v3319_v23 = vld [vmem:[%s6767_s1 + $0x3d0] sm:$0xf0]  ;;  %v3194_v29 = vor.u32 %v4331_v14, %v3191_v15 }
  0x58   :  { %2137 = vmatpush.bf16.msra.mxu3 %v3018_v26  ;;  %v4395_v24 = vld [vmem:[%s6767_s1 + $0x4c4] sm:$0xf]  ;;  %v3447_v25 = vld [vmem:[%s6767_s1 + $0x4d0] sm:$0xf0]  ;;  %v5286_v26 = vpack.c.b16 %v369_v9, %v369_v9  ;;  %v3322_v30 = vor.u32 %v4363_v16, %v3319_v23 }
  0x59   :  { %2099 = vmatpush.bf16.msra.mxu0 %v3894_v32  ;;  %v4427_v27 = vld [vmem:[%s6767_s1 + $0x5c4] sm:$0xf]  ;;  %v3575_v28 = vld [vmem:[%s6767_s1 + $0x5d0] sm:$0xf0]  ;;  %v3450_v31 = vor.u32 %v4395_v24, %v3447_v25 }
  0x5a   :  { %v4327_v32 = vld [vmem:[%s6767_s1 + $0x2a4] sm:$0xf]  ;;  %v3578_v35 = vor.u32 %v4427_v27, %v3575_v28  ;;  %v3303_v36 = vld [vmem:[%s6767_s1 + $0x3b0] sm:$0xf0] }
  0x5b   :  { %2112 = vmatpush.bf16.msra.mxu1 %v4022_v33  ;;  %2125 = vmatpush.bf16.msra.mxu2 %v2874_v34  ;;  %v3175_v33 = vld [vmem:[%s6767_s1 + $0x2b0] sm:$0xf0]  ;;  %v4359_v34 = vld [vmem:[%s6767_s1 + $0x3a4] sm:$0xf] }
  0x5c   :  { %2138 = vmatpush.bf16.msra.mxu3 %v3002_v39  ;;  %v4391_v37 = vld [vmem:[%s6767_s1 + $0x4a4] sm:$0xf]  ;;  %v3431_v39 = vld [vmem:[%s6767_s1 + $0x4b0] sm:$0xf0]  ;;  %v3178_v45 = vor.u32 %v4327_v32, %v3175_v33  ;;  %v3306_v46 = vor.u32 %v4359_v34, %v3303_v36 }
  0x5d   :  { %2100 = vmatpush.bf16.msra.mxu0 %v3878_v48  ;;  %v4423_v40 = vld [vmem:[%s6767_s1 + $0x5a4] sm:$0xf]  ;;  %v3559_v43 = vld [vmem:[%s6767_s1 + $0x5b0] sm:$0xf0]  ;;  %v3434_v47 = vor.u32 %v4391_v37, %v3431_v39 }
  0x5e   :  { %v4323_v48 = vld [vmem:[%s6767_s1 + $0x284] sm:$0xf]  ;;  %v3159_v49 = vld [vmem:[%s6767_s1 + $0x290] sm:$0xf0]  ;;  %v3562_v51 = vor.u32 %v4423_v40, %v3559_v43 }
  0x5f   :  { %2113 = vmatpush.bf16.msra.mxu1 %v4006_v52  ;;  %2126 = vmatpush.bf16.msra.mxu2 %v2858_v53  ;;  %v4355_v50 = vld [vmem:[%s6767_s1 + $0x384] sm:$0xf]  ;;  %v3287_v52 = vld [vmem:[%s6767_s1 + $0x390] sm:$0xf0] }
  0x60   :  { %2139 = vmatpush.bf16.msra.mxu3 %v2986_v57  ;;  %v4387_v53 = vld [vmem:[%s6767_s1 + $0x484] sm:$0xf]  ;;  %v3415_v54 = vld [vmem:[%s6767_s1 + $0x490] sm:$0xf0]  ;;  %v3162_v57 = vor.u32 %v4323_v48, %v3159_v49  ;;  %v3290_v58 = vor.u32 %v4355_v50, %v3287_v52 }
  0x61   :  { %2101 = vmatpush.bf16.msra.mxu0 %v3862_v0  ;;  %v4419_v55 = vld [vmem:[%s6767_s1 + $0x584] sm:$0xf]  ;;  %v3543_v56 = vld [vmem:[%s6767_s1 + $0x590] sm:$0xf0]  ;;  %v3418_v59 = vor.u32 %v4387_v53, %v3415_v54 }
  0x62   :  { %v4319_v60 = vld [vmem:[%s6767_s1 + $0x264] sm:$0xf]  ;;  %v3143_v61 = vld [vmem:[%s6767_s1 + $0x270] sm:$0xf0]  ;;  %v3546_v63 = vor.u32 %v4419_v55, %v3543_v56 }
  0x63   :  { %2114 = vmatpush.bf16.msra.mxu1 %v3990_v5  ;;  %2127 = vmatpush.bf16.msra.mxu2 %v2842_v6  ;;  %v4351_v62 = vld [vmem:[%s6767_s1 + $0x364] sm:$0xf]  ;;  %v3271_v0 = vld [vmem:[%s6767_s1 + $0x370] sm:$0xf0]  ;;  %v3146_v5 = vor.u32 %v4319_v60, %v3143_v61 }
  0x64   :  { %2140 = vmatpush.bf16.msra.mxu3 %v2970_v10  ;;  %2102 = vmatmul.bf16.vlgmr.msra.gmra.mxu0 %v5275_v21  ;;  %v4383_v1 = vld [vmem:[%s6767_s1 + $0x464] sm:$0xf]  ;;  %v3399_v2 = vld [vmem:[%s6767_s1 + $0x470] sm:$0xf0]  ;;  %v3274_v6 = vor.u32 %v4351_v62, %v3271_v0 }
  0x65   :  { %2146 = vmatpush.bf16.msrb.mxu0 %v3210_v11  ;;  %v4415_v3 = vld [vmem:[%s6767_s1 + $0x564] sm:$0xf]  ;;  %v3527_v4 = vld [vmem:[%s6767_s1 + $0x570] sm:$0xf0]  ;;  %v3402_v7 = vor.u32 %v4383_v1, %v3399_v2 }
  0x66   :  { %2115 = vmatmul.bf16.vlgmr.msra.gmra.mxu1 %v5286_v26  ;;  %2128 = vmatmul.bf16.vlgmr.msra.gmra.mxu2 %v4923_v19  ;;  %v4315_v8 = vld [vmem:[%s6767_s1 + $0x244] sm:$0xf]  ;;  %v3127_v9 = vld [vmem:[%s6767_s1 + $0x250] sm:$0xf0]  ;;  %v3530_v11 = vor.u32 %v4415_v3, %v3527_v4 }
  0x67   :  { %2159 = vmatpush.bf16.msrb.mxu1 %v3338_v12  ;;  %2172 = vmatpush.bf16.msrb.mxu2 %v3466_v13  ;;  %v4347_v10 = vld [vmem:[%s6767_s1 + $0x344] sm:$0xf]  ;;  %v3255_v12 = vld [vmem:[%s6767_s1 + $0x350] sm:$0xf0] }
  0x68   :  { %2185 = vmatpush.bf16.msrb.mxu3 %v3594_v17  ;;  %v4379_v13 = vld [vmem:[%s6767_s1 + $0x444] sm:$0xf]  ;;  %v3383_v14 = vld [vmem:[%s6767_s1 + $0x450] sm:$0xf0]  ;;  %v3130_v17 = vor.u32 %v4315_v8, %v3127_v9  ;;  %v3258_v23 = vor.u32 %v4347_v10, %v3255_v12 }
  0x69   :  { %2147 = vmatpush.bf16.msrb.mxu0 %v3194_v29  ;;  %2141 = vmatmul.bf16.vlgmr.msra.gmra.mxu3 %v4927_v22  ;;  %v4411_v15 = vld [vmem:[%s6767_s1 + $0x544] sm:$0xf]  ;;  %v3511_v16 = vld [vmem:[%s6767_s1 + $0x550] sm:$0xf0]  ;;  %v3386_v24 = vor.u32 %v4379_v13, %v3383_v14 }
  0x6a   :  { %v4311_v25 = vld [vmem:[%s6767_s1 + $0x224] sm:$0xf]  ;;  %v3111_v27 = vld [vmem:[%s6767_s1 + $0x230] sm:$0xf0]  ;;  %v3514_v29 = vor.u32 %v4411_v15, %v3511_v16 }
  0x6b   :  { %2160 = vmatpush.bf16.msrb.mxu1 %v3322_v30  ;;  %2173 = vmatpush.bf16.msrb.mxu2 %v3450_v31  ;;  %v4343_v28 = vld [vmem:[%s6767_s1 + $0x324] sm:$0xf]  ;;  %v3239_v30 = vld [vmem:[%s6767_s1 + $0x330] sm:$0xf0] }
  0x6c   :  { %2186 = vmatpush.bf16.msrb.mxu3 %v3578_v35  ;;  %v4375_v31 = vld [vmem:[%s6767_s1 + $0x424] sm:$0xf]  ;;  %v3367_v32 = vld [vmem:[%s6767_s1 + $0x430] sm:$0xf0]  ;;  %v3114_v35 = vor.u32 %v4311_v25, %v3111_v27  ;;  %v3242_v39 = vor.u32 %v4343_v28, %v3239_v30 }
  0x6d   :  { %2148 = vmatpush.bf16.msrb.mxu0 %v3178_v45  ;;  %v4407_v33 = vld [vmem:[%s6767_s1 + $0x524] sm:$0xf]  ;;  %v3495_v34 = vld [vmem:[%s6767_s1 + $0x530] sm:$0xf0]  ;;  %v3370_v40 = vor.u32 %v4375_v31, %v3367_v32 }
  0x6e   :  { %v4307_v36 = vld [vmem:[%s6767_s1 + $0x204] sm:$0xf]  ;;  %v3095_v37 = vld [vmem:[%s6767_s1 + $0x210] sm:$0xf0] }
  0x6f   :  { %2161 = vmatpush.bf16.msrb.mxu1 %v3306_v46  ;;  %2174 = vmatpush.bf16.msrb.mxu2 %v3434_v47  ;;  %v4339_v43 = vld [vmem:[%s6767_s1 + $0x304] sm:$0xf]  ;;  %v3223_v45 = vld [vmem:[%s6767_s1 + $0x310] sm:$0xf0]  ;;  %v3498_v47 = vor.u32 %v4407_v33, %v3495_v34  ;;  %v3098_v54 = vor.u32 %v4307_v36, %v3095_v37 }
  0x70   :  { %2187 = vmatpush.bf16.msrb.mxu3 %v3562_v51  ;;  %v4371_v46 = vld [vmem:[%s6767_s1 + $0x404] sm:$0xf]  ;;  %v3351_v48 = vld [vmem:[%s6767_s1 + $0x410] sm:$0xf0] }
  0x71   :  { %2149 = vmatpush.bf16.msrb.mxu0 %v3162_v57  ;;  %v4403_v49 = vld [vmem:[%s6767_s1 + $0x504] sm:$0xf]  ;;  %v3479_v50 = vld [vmem:[%s6767_s1 + $0x510] sm:$0xf0] }
  0x72   :  { %v4463_v51 = vld [vmem:[%s6767_s1 + $0x6e4] sm:$0xf]  ;;  %v3719_v52 = vld [vmem:[%s6767_s1 + $0x6f0] sm:$0xf0]  ;;  %v3482_v62 = vor.u32 %v4403_v49, %v3479_v50 }
  0x73   :  { %2162 = vmatpush.bf16.msrb.mxu1 %v3290_v58  ;;  %2175 = vmatpush.bf16.msrb.mxu2 %v3418_v59  ;;  %v4495_v53 = vld [vmem:[%s6767_s1 + $0x7e4] sm:$0xf]  ;;  %v3847_v55 = vld [vmem:[%s6767_s1 + $0x7f0] sm:$0xf0]  ;;  %v3226_v58 = vor.u32 %v4339_v43, %v3223_v45  ;;  %v3354_v59 = vor.u32 %v4371_v46, %v3351_v48 }
  0x74   :  { %2188 = vmatpush.bf16.msrb.mxu3 %v3546_v63  ;;  %v4527_v56 = vld [vmem:[%s6767_s1 + $0x8e4] sm:$0xf]  ;;  %v3975_v57 = vld [vmem:[%s6767_s1 + $0x8f0] sm:$0xf0]  ;;  %v3722_v63 = vor.u32 %v4463_v51, %v3719_v52  ;;  %v3850_v0 = vor.u32 %v4495_v53, %v3847_v55 }
  0x75   :  { %2150 = vmatpush.bf16.msrb.mxu0 %v3146_v5  ;;  %v4559_v60 = vld [vmem:[%s6767_s1 + $0x9e4] sm:$0xf]  ;;  %v4103_v61 = vld [vmem:[%s6767_s1 + $0x9f0] sm:$0xf0]  ;;  %v3978_v1 = vor.u32 %v4527_v56, %v3975_v57 }
  0x76   :  { %v4459_v2 = vld [vmem:[%s6767_s1 + $0x6c4] sm:$0xf]  ;;  %v3703_v3 = vld [vmem:[%s6767_s1 + $0x6d0] sm:$0xf0]  ;;  %v4106_v5 = vor.u32 %v4559_v60, %v4103_v61 }
  0x77   :  { %2163 = vmatpush.bf16.msrb.mxu1 %v3274_v6  ;;  %2176 = vmatpush.bf16.msrb.mxu2 %v3402_v7  ;;  %v4491_v4 = vld [vmem:[%s6767_s1 + $0x7c4] sm:$0xf]  ;;  %v3831_v6 = vld [vmem:[%s6767_s1 + $0x7d0] sm:$0xf0] }
  0x78   :  { %2189 = vmatpush.bf16.msrb.mxu3 %v3530_v11  ;;  %v4523_v7 = vld [vmem:[%s6767_s1 + $0x8c4] sm:$0xf]  ;;  %v3959_v8 = vld [vmem:[%s6767_s1 + $0x8d0] sm:$0xf0]  ;;  %v3706_v11 = vor.u32 %v4459_v2, %v3703_v3  ;;  %v3834_v12 = vor.u32 %v4491_v4, %v3831_v6 }
  0x79   :  { %2151 = vmatpush.bf16.msrb.mxu0 %v3130_v17  ;;  %v4555_v9 = vld [vmem:[%s6767_s1 + $0x9c4] sm:$0xf]  ;;  %v4087_v10 = vld [vmem:[%s6767_s1 + $0x9d0] sm:$0xf0]  ;;  %v3962_v13 = vor.u32 %v4523_v7, %v3959_v8 }
  0x7a   :  { %v4455_v14 = vld [vmem:[%s6767_s1 + $0x6a4] sm:$0xf]  ;;  %v3687_v15 = vld [vmem:[%s6767_s1 + $0x6b0] sm:$0xf0]  ;;  %v4090_v17 = vor.u32 %v4555_v9, %v4087_v10 }
  0x7b   :  { %2164 = vmatpush.bf16.msrb.mxu1 %v3258_v23  ;;  %2177 = vmatpush.bf16.msrb.mxu2 %v3386_v24  ;;  %v4487_v16 = vld [vmem:[%s6767_s1 + $0x7a4] sm:$0xf]  ;;  %v3815_v23 = vld [vmem:[%s6767_s1 + $0x7b0] sm:$0xf0] }
  0x7c   :  { %2190 = vmatpush.bf16.msrb.mxu3 %v3514_v29  ;;  %v4519_v24 = vld [vmem:[%s6767_s1 + $0x8a4] sm:$0xf]  ;;  %v3943_v25 = vld [vmem:[%s6767_s1 + $0x8b0] sm:$0xf0]  ;;  %v3690_v29 = vor.u32 %v4455_v14, %v3687_v15  ;;  %v3818_v30 = vor.u32 %v4487_v16, %v3815_v23 }
  0x7d   :  { %2152 = vmatpush.bf16.msrb.mxu0 %v3114_v35  ;;  %v4551_v27 = vld [vmem:[%s6767_s1 + $0x9a4] sm:$0xf]  ;;  %v4071_v28 = vld [vmem:[%s6767_s1 + $0x9b0] sm:$0xf0]  ;;  %v3946_v31 = vor.u32 %v4519_v24, %v3943_v25 }
  0x7e   :  { %v4451_v32 = vld [vmem:[%s6767_s1 + $0x684] sm:$0xf]  ;;  %v3671_v33 = vld [vmem:[%s6767_s1 + $0x690] sm:$0xf0]  ;;  %v4074_v35 = vor.u32 %v4551_v27, %v4071_v28 }
  0x7f   :  { %2165 = vmatpush.bf16.msrb.mxu1 %v3242_v39  ;;  %2178 = vmatpush.bf16.msrb.mxu2 %v3370_v40  ;;  %v4483_v34 = vld [vmem:[%s6767_s1 + $0x784] sm:$0xf]  ;;  %v3799_v36 = vld [vmem:[%s6767_s1 + $0x790] sm:$0xf0]  ;;  %v3674_v45 = vor.u32 %v4451_v32, %v3671_v33 }
  0x80   :  { %2191 = vmatpush.bf16.msrb.mxu3 %v3498_v47  ;;  %v4515_v37 = vld [vmem:[%s6767_s1 + $0x884] sm:$0xf]  ;;  %v3927_v39 = vld [vmem:[%s6767_s1 + $0x890] sm:$0xf0]  ;;  %v3802_v46 = vor.u32 %v4483_v34, %v3799_v36  ;;  %v4274_v36 = vld [vmem:[%s6767_s1 + $0xf4] sm:$0xf0] }
  0x81   :  { %2153 = vmatpush.bf16.msrb.mxu0 %v3098_v54  ;;  %v4547_v40 = vld [vmem:[%s6767_s1 + $0x984] sm:$0xf]  ;;  %v4055_v43 = vld [vmem:[%s6767_s1 + $0x990] sm:$0xf0]  ;;  %v3930_v47 = vor.u32 %v4515_v37, %v3927_v39  ;;  %v3085_v37 = vld [vmem:[%s6767_s1 + $0x1e8] sm:$0xf] }
  0x82   :  { %v4447_v48 = vld [vmem:[%s6767_s1 + $0x664] sm:$0xf]  ;;  %v3655_v49 = vld [vmem:[%s6767_s1 + $0x670] sm:$0xf0]  ;;  %v4058_v51 = vor.u32 %v4547_v40, %v4055_v43  ;;  %v4306_v40 = vld [vmem:[%s6767_s1 + $0x1f4] sm:$0xf0] }
  0x83   :  { %2166 = vmatpush.bf16.msrb.mxu1 %v3226_v58  ;;  %2179 = vmatpush.bf16.msrb.mxu2 %v3354_v59  ;;  %v4479_v50 = vld [vmem:[%s6767_s1 + $0x764] sm:$0xf]  ;;  %v3783_v52 = vld [vmem:[%s6767_s1 + $0x770] sm:$0xf0]  ;;  %v3658_v57 = vor.u32 %v4447_v48, %v3655_v49  ;;  %v3213_v43 = vld [vmem:[%s6767_s1 + $0x2e8] sm:$0xf] }
  0x84   :  { %2192 = vmatpush.bf16.msrb.mxu3 %v3482_v62  ;;  %2154 = vmatmul.bf16.vlgmr.msrb.gmra.mxu0 %v4921_v18  ;;  %v4511_v53 = vld [vmem:[%s6767_s1 + $0x864] sm:$0xf]  ;;  %v3911_v54 = vld [vmem:[%s6767_s1 + $0x870] sm:$0xf0]  ;;  %v3786_v58 = vor.u32 %v4479_v50, %v3783_v52  ;;  %v3341_v48 = vld [vmem:[%s6767_s1 + $0x3e8] sm:$0xf]  ;;  %v3086_v52 = vor.u32 %v4306_v40, %v3085_v37 }
  0x85   :  { %2198 = vmatpush.bf16.msra.mxu0 %v3722_v63  ;;  %v4543_v55 = vld [vmem:[%s6767_s1 + $0x964] sm:$0xf]  ;;  %v4039_v56 = vld [vmem:[%s6767_s1 + $0x970] sm:$0xf0]  ;;  %v3914_v59 = vor.u32 %v4511_v53, %v3911_v54  ;;  %v4370_v49 = vld [vmem:[%s6767_s1 + $0x3f4] sm:$0xf0] }
  0x86   :  { %2180 = vmatmul.bf16.vlgmr.msrb.gmra.mxu2 %v5085_v41  ;;  %2167 = vmatmul.bf16.vlgmr.msrb.gmra.mxu1 %v4925_v20  ;;  %v4443_v60 = vld [vmem:[%s6767_s1 + $0x644] sm:$0xf]  ;;  %v3639_v61 = vld [vmem:[%s6767_s1 + $0x650] sm:$0xf0]  ;;  %v4042_v63 = vor.u32 %v4543_v55, %v4039_v56  ;;  %v2941_v54 = vld [vmem:[%s6767_s1 + $0xc8] sm:$0xf] }
  0x87   :  { %2211 = vmatpush.bf16.msra.mxu1 %v3850_v0  ;;  %2224 = vmatpush.bf16.msra.mxu2 %v3978_v1  ;;  %v4475_v62 = vld [vmem:[%s6767_s1 + $0x744] sm:$0xf]  ;;  %v3767_v0 = vld [vmem:[%s6767_s1 + $0x750] sm:$0xf0]  ;;  %v4270_v55 = vld [vmem:[%s6767_s1 + $0xd4] sm:$0xf0] }
  0x88   :  { %2237 = vmatpush.bf16.msra.mxu3 %v4106_v5  ;;  %v4507_v1 = vld [vmem:[%s6767_s1 + $0x844] sm:$0xf]  ;;  %v3895_v2 = vld [vmem:[%s6767_s1 + $0x850] sm:$0xf0]  ;;  %v3642_v5 = vor.u32 %v4443_v60, %v3639_v61  ;;  %v3770_v6 = vor.u32 %v4475_v62, %v3767_v0  ;;  %v3069_v56 = vld [vmem:[%s6767_s1 + $0x1c8] sm:$0xf] }
  0x89   :  { %2193 = vmatmul.bf16.vlgmr.msrb.gmra.mxu3 %v5089_v44  ;;  %2199 = vmatpush.bf16.msra.mxu0 %v3706_v11  ;;  %v4539_v3 = vld [vmem:[%s6767_s1 + $0x944] sm:$0xf]  ;;  %v4023_v4 = vld [vmem:[%s6767_s1 + $0x950] sm:$0xf0]  ;;  %v3898_v7 = vor.u32 %v4507_v1, %v3895_v2  ;;  %v4334_v60 = vld [vmem:[%s6767_s1 + $0x2d4] sm:$0xf0] }
  0x8a   :  { %v4439_v8 = vld [vmem:[%s6767_s1 + $0x624] sm:$0xf]  ;;  %v3623_v9 = vld [vmem:[%s6767_s1 + $0x630] sm:$0xf0]  ;;  %v4026_v11 = vor.u32 %v4539_v3, %v4023_v4  ;;  %v3325_v61 = vld [vmem:[%s6767_s1 + $0x3c8] sm:$0xf] }
  0x8b   :  { %2212 = vmatpush.bf16.msra.mxu1 %v3834_v12  ;;  %2225 = vmatpush.bf16.msra.mxu2 %v3962_v13  ;;  %v4471_v10 = vld [vmem:[%s6767_s1 + $0x724] sm:$0xf]  ;;  %v3751_v12 = vld [vmem:[%s6767_s1 + $0x730] sm:$0xf0]  ;;  %v4366_v62 = vld [vmem:[%s6767_s1 + $0x3d4] sm:$0xf0] }
  0x8c   :  { %2238 = vmatpush.bf16.msra.mxu3 %v4090_v17  ;;  %v4503_v13 = vld [vmem:[%s6767_s1 + $0x824] sm:$0xf]  ;;  %v3879_v14 = vld [vmem:[%s6767_s1 + $0x830] sm:$0xf0]  ;;  %v3626_v17 = vor.u32 %v4439_v8, %v3623_v9  ;;  %v3754_v25 = vor.u32 %v4471_v10, %v3751_v12  ;;  %v2925_v2 = vld [vmem:[%s6767_s1 + $0xa8] sm:$0xf] }
  0x8d   :  { %2200 = vmatpush.bf16.msra.mxu0 %v3690_v29  ;;  %v4535_v15 = vld [vmem:[%s6767_s1 + $0x924] sm:$0xf]  ;;  %v4007_v16 = vld [vmem:[%s6767_s1 + $0x930] sm:$0xf0]  ;;  %v3882_v27 = vor.u32 %v4503_v13, %v3879_v14  ;;  %v4266_v3 = vld [vmem:[%s6767_s1 + $0xb4] sm:$0xf0] }
  0x8e   :  { %v4435_v23 = vld [vmem:[%s6767_s1 + $0x604] sm:$0xf]  ;;  %v3607_v24 = vld [vmem:[%s6767_s1 + $0x610] sm:$0xf0]  ;;  %v3053_v4 = vld [vmem:[%s6767_s1 + $0x1a8] sm:$0xf] }
  0x8f   :  { %2213 = vmatpush.bf16.msra.mxu1 %v3818_v30  ;;  %2226 = vmatpush.bf16.msra.mxu2 %v3946_v31  ;;  %v4467_v28 = vld [vmem:[%s6767_s1 + $0x704] sm:$0xf]  ;;  %v3735_v29 = vld [vmem:[%s6767_s1 + $0x710] sm:$0xf0]  ;;  %v4010_v31 = vor.u32 %v4535_v15, %v4007_v16  ;;  %v3610_v39 = vor.u32 %v4435_v23, %v3607_v24  ;;  %v4330_v8 = vld [vmem:[%s6767_s1 + $0x2b4] sm:$0xf0] }
  0x90   :  { %2239 = vmatpush.bf16.msra.mxu3 %v4074_v35  ;;  %v4499_v30 = vld [vmem:[%s6767_s1 + $0x804] sm:$0xf]  ;;  %v3863_v32 = vld [vmem:[%s6767_s1 + $0x810] sm:$0xf0]  ;;  %v2957_v35 = vld [vmem:[%s6767_s1 + $0xe8] sm:$0xf] }
  0x91   :  { %2201 = vmatpush.bf16.msra.mxu0 %v3674_v45  ;;  %v4531_v33 = vld [vmem:[%s6767_s1 + $0x904] sm:$0xf]  ;;  %v3991_v34 = vld [vmem:[%s6767_s1 + $0x910] sm:$0xf0]  ;;  %v4338_v45 = vld [vmem:[%s6767_s1 + $0x2f4] sm:$0xf0] }
  0x92   :  { %v3994_v50 = vor.u32 %v4531_v33, %v3991_v34  ;;  %v3214_v53 = vor.u32 %v4338_v45, %v3213_v43  ;;  %v3309_v9 = vld [vmem:[%s6767_s1 + $0x3a8] sm:$0xf]  ;;  %v4362_v10 = vld [vmem:[%s6767_s1 + $0x3b4] sm:$0xf0]  ;;  %v5759_v40 = vld [vmem:[%s6769_s2] sm:$0xf] }
  0x93   :  { %2214 = vmatpush.bf16.msra.mxu1 %v3802_v46  ;;  %2227 = vmatpush.bf16.msra.mxu2 %v3930_v47  ;;  %v3738_v46 = vor.u32 %v4467_v28, %v3735_v29  ;;  %v3866_v47 = vor.u32 %v4499_v30, %v3863_v32  ;;  %v2909_v14 = vld [vmem:[%s6767_s1 + $0x88] sm:$0xf]  ;;  %v4262_v15 = vld [vmem:[%s6767_s1 + $0x94] sm:$0xf0] }
  0x94   :  { %2240 = vmatpush.bf16.msra.mxu3 %v4058_v51  ;;  %v2958_v51 = vor.u32 %v4274_v36, %v2957_v35  ;;  %v3037_v16 = vld [vmem:[%s6767_s1 + $0x188] sm:$0xf]  ;;  %v4294_v23 = vld [vmem:[%s6767_s1 + $0x194] sm:$0xf0]  ;;  %v2910_v29 = vor.u32 %v4262_v15, %v2909_v14 }
  0x95   :  { %2202 = vmatpush.bf16.msra.mxu0 %v3658_v57  ;;  %v3342_v57 = vor.u32 %v4370_v49, %v3341_v48  ;;  %v3165_v24 = vld [vmem:[%s6767_s1 + $0x288] sm:$0xf]  ;;  %v4358_v28 = vld [vmem:[%s6767_s1 + $0x394] sm:$0xf0] }
  0x96   :  { %v2893_v30 = vld [vmem:[%s6767_s1 + $0x68] sm:$0xf]  ;;  %v4258_v33 = vld [vmem:[%s6767_s1 + $0x74] sm:$0xf0] }
  0x97   :  { %2215 = vmatpush.bf16.msra.mxu1 %v3786_v58  ;;  %2228 = vmatpush.bf16.msra.mxu2 %v3914_v59  ;;  %v4302_v58 = vld [vmem:[%s6767_s1 + $0x1d4] sm:$0xf0]  ;;  %v3197_v59 = vld [vmem:[%s6767_s1 + $0x2c8] sm:$0xf] }
  0x98   :  { %2241 = vmatpush.bf16.msra.mxu3 %v4042_v63  ;;  %v2942_v63 = vor.u32 %v4270_v55, %v2941_v54  ;;  %v3070_v0 = vor.u32 %v4302_v58, %v3069_v56  ;;  %v3198_v1 = vor.u32 %v4334_v60, %v3197_v59  ;;  %v3021_v34 = vld [vmem:[%s6767_s1 + $0x168] sm:$0xf]  ;;  %v4290_v35 = vld [vmem:[%s6767_s1 + $0x174] sm:$0xf0] }
  0x99   :  { %2203 = vmatpush.bf16.msra.mxu0 %v3642_v5  ;;  %v3326_v5 = vor.u32 %v4366_v62, %v3325_v61  ;;  %v3149_v37 = vld [vmem:[%s6767_s1 + $0x268] sm:$0xf]  ;;  %v4354_v45 = vld [vmem:[%s6767_s1 + $0x374] sm:$0xf0]  ;;  %v3022_v48 = vor.u32 %v4290_v35, %v3021_v34 }
  0x9a   :  { %v3277_v43 = vld [vmem:[%s6767_s1 + $0x368] sm:$0xf]  ;;  %v4286_v54 = vld [vmem:[%s6767_s1 + $0x154] sm:$0xf0] }
  0x9b   :  { %2216 = vmatpush.bf16.msra.mxu1 %v3770_v6  ;;  %2229 = vmatpush.bf16.msra.mxu2 %v3898_v7  ;;  %v4298_v6 = vld [vmem:[%s6767_s1 + $0x1b4] sm:$0xf0]  ;;  %v3181_v7 = vld [vmem:[%s6767_s1 + $0x2a8] sm:$0xf] }
  0x9c   :  { %2242 = vmatpush.bf16.msra.mxu3 %v4026_v11  ;;  %v2926_v11 = vor.u32 %v4266_v3, %v2925_v2  ;;  %v3054_v12 = vor.u32 %v4298_v6, %v3053_v4  ;;  %v3182_v13 = vor.u32 %v4330_v8, %v3181_v7  ;;  %v3133_v55 = vld [vmem:[%s6767_s1 + $0x248] sm:$0xf]  ;;  %v4318_v56 = vld [vmem:[%s6767_s1 + $0x254] sm:$0xf0] }
  0x9d   :  { %2204 = vmatpush.bf16.msra.mxu0 %v3626_v17  ;;  %v3310_v17 = vor.u32 %v4362_v10, %v3309_v9  ;;  %v4350_v58 = vld [vmem:[%s6767_s1 + $0x354] sm:$0xf0]  ;;  %v3134_v62 = vor.u32 %v4318_v56, %v3133_v55  ;;  %v3117_v6 = vld [vmem:[%s6767_s1 + $0x228] sm:$0xf] }
  0x9e   :  { %v4314_v7 = vld [vmem:[%s6767_s1 + $0x234] sm:$0xf0]  ;;  %v3245_v8 = vld [vmem:[%s6767_s1 + $0x328] sm:$0xf] }
  0x9f   :  { %2217 = vmatpush.bf16.msra.mxu1 %v3754_v25  ;;  %2230 = vmatpush.bf16.msra.mxu2 %v3882_v27  ;;  %v4326_v25 = vld [vmem:[%s6767_s1 + $0x294] sm:$0xf0]  ;;  %v3293_v27 = vld [vmem:[%s6767_s1 + $0x388] sm:$0xf]  ;;  %v3118_v15 = vor.u32 %v4314_v7, %v3117_v6 }
  0xa0   :  { %2243 = vmatpush.bf16.msra.mxu3 %v4010_v31  ;;  %v3038_v31 = vor.u32 %v4294_v23, %v3037_v16  ;;  %v3166_v32 = vor.u32 %v4326_v25, %v3165_v24  ;;  %v3294_v36 = vor.u32 %v4358_v28, %v3293_v27  ;;  %v4346_v9 = vld [vmem:[%s6767_s1 + $0x334] sm:$0xf0]  ;;  %v2973_v16 = vld [vmem:[%s6767_s1 + $0x108] sm:$0xf] }
  0xa1   :  { %2205 = vmatpush.bf16.msra.mxu0 %v3610_v39  ;;  %v4322_v39 = vld [vmem:[%s6767_s1 + $0x274] sm:$0xf0]  ;;  %v3101_v23 = vld [vmem:[%s6767_s1 + $0x208] sm:$0xf]  ;;  %v3246_v25 = vor.u32 %v4346_v9, %v3245_v8 }
  0xa2   :  { %v3150_v49 = vor.u32 %v4322_v39, %v3149_v37  ;;  %v4310_v27 = vld [vmem:[%s6767_s1 + $0x214] sm:$0xf0]  ;;  %v3229_v28 = vld [vmem:[%s6767_s1 + $0x308] sm:$0xf] }
  0xa3   :  { %2218 = vmatpush.bf16.msra.mxu1 %v3738_v46  ;;  %2231 = vmatpush.bf16.msra.mxu2 %v3866_v47  ;;  %v2894_v46 = vor.u32 %v4258_v33, %v2893_v30  ;;  %v2877_v47 = vld [vmem:[%s6767_s1 + $0x48] sm:$0xf]  ;;  %v4402_v33 = vld [vmem:[%s6767_s1 + $0x4f4] sm:$0xf0] }
  0xa4   :  { %2244 = vmatpush.bf16.msra.mxu3 %v3994_v50  ;;  %2206 = vmatmul.bf16.vlgmr.msra.gmra.mxu0 %v5077_v38  ;;  %v4254_v50 = vld [vmem:[%s6767_s1 + $0x54] sm:$0xf0]  ;;  %v3597_v34 = vld [vmem:[%s6767_s1 + $0x5e8] sm:$0xf] }
  0xa5   :  { %2250 = vmatpush.bf16.msrb.mxu0 %v2958_v51  ;;  %v3005_v51 = vld [vmem:[%s6767_s1 + $0x148] sm:$0xf]  ;;  %v2878_v59 = vor.u32 %v4254_v50, %v2877_v47  ;;  %v4466_v39 = vld [vmem:[%s6767_s1 + $0x6f4] sm:$0xf0]  ;;  %v3102_v47 = vor.u32 %v4310_v27, %v3101_v23 }
  0xa6   :  { %2232 = vmatmul.bf16.vlgmr.msra.gmra.mxu2 %v5275_v21  ;;  %2219 = vmatmul.bf16.vlgmr.msra.gmra.mxu1 %v5087_v42  ;;  %v3006_v61 = vor.u32 %v4286_v54, %v3005_v51  ;;  %v3725_v37 = vld [vmem:[%s6767_s1 + $0x6e8] sm:$0xf]  ;;  %v4398_v56 = vld [vmem:[%s6767_s1 + $0x4d4] sm:$0xf0] }
  0xa7   :  { %2263 = vmatpush.bf16.msrb.mxu1 %v3086_v52  ;;  %2276 = vmatpush.bf16.msrb.mxu2 %v3214_v53  ;;  %v347_v52 = vperm.slane %v5759_v40, 0  ;;  %v3278_v53 = vor.u32 %v4354_v45, %v3277_v43  ;;  %v3726_v54 = vor.u32 %v4466_v39, %v3725_v37  ;;  %v3453_v55 = vld [vmem:[%s6767_s1 + $0x4c8] sm:$0xf]  ;;  %v4394_v6 = vld [vmem:[%s6767_s1 + $0x4b4] sm:$0xf0] }
  0xa8   :  { %2289 = vmatpush.bf16.msrb.mxu3 %v3342_v57  ;;  %v3261_v57 = vld [vmem:[%s6767_s1 + $0x348] sm:$0xf]  ;;  %v2025_v24 = vpop.f32.mrf.mxu2  ;;  %v4426_v9 = vld [vmem:[%s6767_s1 + $0x5b4] sm:$0xf0] }
  0xa9   :  { %2245 = vmatmul.bf16.vlgmr.msra.gmra.mxu3 %v5286_v26  ;;  %2251 = vmatpush.bf16.msrb.mxu0 %v2942_v63  ;;  %v2861_v63 = vld [vmem:[%s6767_s1 + $0x28] sm:$0xf]  ;;  %v3262_v4 = vor.u32 %v4350_v58, %v3261_v57  ;;  %v4390_v23 = vld [vmem:[%s6767_s1 + $0x494] sm:$0xf0] }
  0xaa   :  { %v3581_v57 = vld [vmem:[%s6767_s1 + $0x5c8] sm:$0xf]  ;;  %v4422_v27 = vld [vmem:[%s6767_s1 + $0x594] sm:$0xf0] }
  0xab   :  { %2264 = vmatpush.bf16.msrb.mxu1 %v3070_v0  ;;  %2277 = vmatpush.bf16.msrb.mxu2 %v3198_v1  ;;  %v4250_v0 = vld [vmem:[%s6767_s1 + $0x34] sm:$0xf0]  ;;  %v2989_v1 = vld [vmem:[%s6767_s1 + $0x128] sm:$0xf] }
  0xac   :  { %2290 = vmatpush.bf16.msrb.mxu3 %v3326_v5  ;;  %v4282_v5 = vld [vmem:[%s6767_s1 + $0x134] sm:$0xf0]  ;;  %v3565_v7 = vld [vmem:[%s6767_s1 + $0x5a8] sm:$0xf] }
  0xad   :  { %2252 = vmatpush.bf16.msrb.mxu0 %v2926_v11  ;;  %v2862_v11 = vor.u32 %v4250_v0, %v2861_v63  ;;  %v2990_v14 = vor.u32 %v4282_v5, %v2989_v1  ;;  %v4494_v63 = vld [vmem:[%s6767_s1 + $0x7d4] sm:$0xf0]  ;;  %v3454_v1 = vor.u32 %v4398_v56, %v3453_v55  ;;  %v3437_v5 = vld [vmem:[%s6767_s1 + $0x4a8] sm:$0xf] }
  0xae   :  { %v4386_v37 = vld [vmem:[%s6767_s1 + $0x474] sm:$0xf0]  ;;  %v3533_v39 = vld [vmem:[%s6767_s1 + $0x568] sm:$0xf] }
  0xaf   :  { %2265 = vmatpush.bf16.msrb.mxu1 %v3054_v12  ;;  %2278 = vmatpush.bf16.msrb.mxu2 %v3182_v13  ;;  %v1999_v60 = vpop.f32.mrf.mxu0  ;;  %v2012_v3 = vpop.f32.mrf.mxu1  ;;  %v2845_v12 = vld [vmem:[%s6767_s1 + $0x8] sm:$0xf]  ;;  %v4246_v13 = vld [vmem:[%s6767_s1 + $0x14] sm:$0xf0] }
  0xb0   :  { %2291 = vmatpush.bf16.msrb.mxu3 %v3310_v17  ;;  %v2000_v2 = vadd.f32 %v1999_v60, %v347_v52  ;;  %v4278_v17 = vld [vmem:[%s6767_s1 + $0x114] sm:$0xf0]  ;;  %v2846_v35 = vor.u32 %v4246_v13, %v2845_v12  ;;  %v3709_v60 = vld [vmem:[%s6767_s1 + $0x6c8] sm:$0xf]  ;;  %v2027_v0 = vpop.f32.mrf.mxu2 }
  0xb1   :  { %2253 = vmatpush.bf16.msrb.mxu0 %v2910_v29  ;;  %v4342_v29 = vld [vmem:[%s6767_s1 + $0x314] sm:$0xf0]  ;;  %v3821_v12 = vld [vmem:[%s6767_s1 + $0x7a8] sm:$0xf] }
  0xb2   :  { %v2013_v10 = vadd.f32 %v2012_v3, %v2000_v2  ;;  %v3230_v51 = vor.u32 %v4342_v29, %v3229_v28  ;;  %v4490_v13 = vld [vmem:[%s6767_s1 + $0x7b4] sm:$0xf0]  ;;  %v3677_v28 = vld [vmem:[%s6767_s1 + $0x688] sm:$0xf] }
  0xb3   :  { %2266 = vmatpush.bf16.msrb.mxu1 %v3038_v31  ;;  %2279 = vmatpush.bf16.msrb.mxu2 %v3166_v32  ;;  %v2038_v31 = vpop.f32.mrf.mxu3  ;;  %v3469_v32 = vld [vmem:[%s6767_s1 + $0x4e8] sm:$0xf]  ;;  %v4454_v29 = vld [vmem:[%s6767_s1 + $0x694] sm:$0xf0] }
  0xb4   :  { %2292 = vmatpush.bf16.msrb.mxu3 %v3294_v36  ;;  %v2026_v30 = vadd.f32 %v2025_v24, %v2013_v10  ;;  %v4434_v36 = vld [vmem:[%s6767_s1 + $0x5f4] sm:$0xf0]  ;;  %v3470_v52 = vor.u32 %v4402_v33, %v3469_v32  ;;  %v3693_v10 = vld [vmem:[%s6767_s1 + $0x6a8] sm:$0xf] }
  0xb5   :  { %2254 = vmatpush.bf16.msrb.mxu0 %v2894_v46  ;;  %v2974_v46 = vor.u32 %v4278_v17, %v2973_v16  ;;  %v3421_v17 = vld [vmem:[%s6767_s1 + $0x488] sm:$0xf] }
  0xb6   :  { %v5858_v43 = vadd.f32 %v2038_v31, %v2026_v30  ;;  %v3549_v24 = vld [vmem:[%s6767_s1 + $0x588] sm:$0xf]  ;;  %v4486_v31 = vld [vmem:[%s6767_s1 + $0x794] sm:$0xf0]  ;;  %v3422_v32 = vor.u32 %v4390_v23, %v3421_v17 }
  0xb7   :  { %2267 = vmatpush.bf16.msrb.mxu1 %v3022_v48  ;;  %2280 = vmatpush.bf16.msrb.mxu2 %v3150_v49  ;;  %v2001_v45 = vpop.f32.mrf.mxu0  ;;  %v3853_v48 = vld [vmem:[%s6767_s1 + $0x7e8] sm:$0xf]  ;;  %v4498_v49 = vld [vmem:[%s6767_s1 + $0x7f4] sm:$0xf0]  ;;  %v2014_v50 = vpop.f32.mrf.mxu1 }
  0xb8   :  { %2293 = vmatpush.bf16.msrb.mxu3 %v3278_v53  ;;  %v3598_v53 = vor.u32 %v4434_v36, %v3597_v34  ;;  %v3854_v58 = vor.u32 %v4498_v49, %v3853_v48  ;;  %v3805_v30 = vld [vmem:[%s6767_s1 + $0x788] sm:$0xf]  ;;  %v3550_v34 = vor.u32 %v4422_v27, %v3549_v24  ;;  %v4418_v48 = vld [vmem:[%s6767_s1 + $0x574] sm:$0xf0] }
  0xb9   :  { %2255 = vmatpush.bf16.msrb.mxu0 %v2878_v59  ;;  %v4430_v59 = vld [vmem:[%s6767_s1 + $0x5d4] sm:$0xf0]  ;;  %v3405_v36 = vld [vmem:[%s6767_s1 + $0x468] sm:$0xf] }
  0xba   :  { %v3582_v3 = vor.u32 %v4430_v59, %v3581_v57  ;;  %v3661_v49 = vld [vmem:[%s6767_s1 + $0x668] sm:$0xf]  ;;  %v4450_v50 = vld [vmem:[%s6767_s1 + $0x674] sm:$0xf0] }
  0xbb   :  { %2268 = vmatpush.bf16.msrb.mxu1 %v3006_v61  ;;  %2281 = vmatpush.bf16.msrb.mxu2 %v3134_v62  ;;  %v4462_v61 = vld [vmem:[%s6767_s1 + $0x6d4] sm:$0xf0]  ;;  %v3837_v62 = vld [vmem:[%s6767_s1 + $0x7c8] sm:$0xf]  ;;  %v2040_v2 = vpop.f32.mrf.mxu3  ;;  %v3662_v55 = vor.u32 %v4450_v50, %v3661_v49  ;;  %v4272_v50 = vld [vmem:[%s6767_s1 + $0xec] sm:$0xf] }
  0xbc   :  { %2294 = vmatpush.bf16.msrb.mxu3 %v3262_v4  ;;  %v3710_v4 = vor.u32 %v4462_v61, %v3709_v60  ;;  %v3838_v8 = vor.u32 %v4494_v63, %v3837_v62  ;;  %v3389_v56 = vld [vmem:[%s6767_s1 + $0x448] sm:$0xf]  ;;  %v4382_v57 = vld [vmem:[%s6767_s1 + $0x454] sm:$0xf0] }
  0xbd   :  { %2256 = vmatpush.bf16.msrb.mxu0 %v2862_v11  ;;  %v4458_v11 = vld [vmem:[%s6767_s1 + $0x6b4] sm:$0xf0]  ;;  %v3645_v62 = vld [vmem:[%s6767_s1 + $0x648] sm:$0xf] }
  0xbe   :  { %v3694_v16 = vor.u32 %v4458_v11, %v3693_v10  ;;  %v4414_v61 = vld [vmem:[%s6767_s1 + $0x554] sm:$0xf0]  ;;  %v3773_v2 = vld [vmem:[%s6767_s1 + $0x748] sm:$0xf] }
  0xbf   :  { %2269 = vmatpush.bf16.msrb.mxu1 %v2990_v14  ;;  %2282 = vmatpush.bf16.msrb.mxu2 %v3118_v15  ;;  %v3438_v14 = vor.u32 %v4394_v6, %v3437_v5  ;;  %v3566_v15 = vor.u32 %v4426_v9, %v3565_v7  ;;  %v4446_v63 = vld [vmem:[%s6767_s1 + $0x654] sm:$0xf0]  ;;  %v3373_v9 = vld [vmem:[%s6767_s1 + $0x428] sm:$0xf] }
  0xc0   :  { %2295 = vmatpush.bf16.msrb.mxu3 %v3246_v25  ;;  %v3822_v25 = vor.u32 %v4490_v13, %v3821_v12  ;;  %v4378_v10 = vld [vmem:[%s6767_s1 + $0x434] sm:$0xf0]  ;;  %v3501_v11 = vld [vmem:[%s6767_s1 + $0x528] sm:$0xf] }
  0xc1   :  { %2257 = vmatpush.bf16.msrb.mxu0 %v2846_v35  ;;  %v3678_v35 = vor.u32 %v4454_v29, %v3677_v28  ;;  %v3757_v17 = vld [vmem:[%s6767_s1 + $0x728] sm:$0xf]  ;;  %v4474_v23 = vld [vmem:[%s6767_s1 + $0x734] sm:$0xf0]  ;;  %v3374_v24 = vor.u32 %v4378_v10, %v3373_v9 }
  0xc2   :  { %v4374_v27 = vld [vmem:[%s6767_s1 + $0x414] sm:$0xf0]  ;;  %v4077_v10 = vld [vmem:[%s6767_s1 + $0x9a8] sm:$0xf] }
  0xc3   :  { %2270 = vmatpush.bf16.msrb.mxu1 %v2974_v46  ;;  %2283 = vmatpush.bf16.msrb.mxu2 %v3102_v47  ;;  %v2051_v33 = vpop.f32.mrf.mxu0  ;;  %v3806_v47 = vor.u32 %v4486_v31, %v3805_v30  ;;  %v3485_v30 = vld [vmem:[%s6767_s1 + $0x508] sm:$0xf]  ;;  %v4406_v31 = vld [vmem:[%s6767_s1 + $0x514] sm:$0xf0] }
  0xc4   :  { %2296 = vmatpush.bf16.msrb.mxu3 %v3230_v51  ;;  %2258 = vmatmul.bf16.vlgmr.msrb.gmra.mxu0 %v4923_v19  ;;  %v2052_v45 = vadd.f32 %v2051_v33, %v5858_v43  ;;  %v3789_v51 = vld [vmem:[%s6767_s1 + $0x768] sm:$0xf]  ;;  %v4482_v43 = vld [vmem:[%s6767_s1 + $0x774] sm:$0xf0] }
  0xc5   :  { %2302 = vmatpush.bf16.msra.mxu0 %v3470_v52  ;;  %v2064_v46 = vpop.f32.mrf.mxu1  ;;  %v3790_v60 = vor.u32 %v4482_v43, %v3789_v51  ;;  %v4562_v49 = vld [vmem:[%s6767_s1 + $0x9f4] sm:$0xf0]  ;;  %v2959_v51 = vld [vmem:[%s6767_s1 + $0xf8] sm:$0xf0]  ;;  %v3486_v43 = vor.u32 %v4406_v31, %v3485_v30  ;;  %v4260_v31 = vld [vmem:[%s6767_s1 + $0x8c] sm:$0xf] }
  0xc6   :  { %2284 = vmatmul.bf16.vlgmr.msrb.gmra.mxu2 %v4921_v18  ;;  %2271 = vmatmul.bf16.vlgmr.msrb.gmra.mxu1 %v4927_v22  ;;  %v2065_v52 = vadd.f32 %v2064_v46, %v2052_v45  ;;  %v3981_v45 = vld [vmem:[%s6767_s1 + $0x8e8] sm:$0xf]  ;;  %v4530_v46 = vld [vmem:[%s6767_s1 + $0x8f4] sm:$0xf0] }
  0xc7   :  { %2315 = vmatpush.bf16.msra.mxu1 %v3598_v53  ;;  %2328 = vmatpush.bf16.msra.mxu2 %v3726_v54  ;;  %v3406_v53 = vor.u32 %v4386_v37, %v3405_v36  ;;  %v3534_v54 = vor.u32 %v4418_v48, %v3533_v39  ;;  %v3741_v36 = vld [vmem:[%s6767_s1 + $0x708] sm:$0xf]  ;;  %v4470_v37 = vld [vmem:[%s6767_s1 + $0x714] sm:$0xf0] }
  0xc8   :  { %2341 = vmatpush.bf16.msra.mxu3 %v3854_v58  ;;  %v3517_v58 = vld [vmem:[%s6767_s1 + $0x548] sm:$0xf]  ;;  %v4522_v9 = vld [vmem:[%s6767_s1 + $0x8b4] sm:$0xf0] }
  0xc9   :  { %2297 = vmatmul.bf16.vlgmr.msrb.gmra.mxu3 %v4925_v20  ;;  %2303 = vmatpush.bf16.msra.mxu0 %v3454_v1  ;;  %v2077_v59 = vpop.f32.mrf.mxu2  ;;  %v3518_v7 = vor.u32 %v4414_v61, %v3517_v58  ;;  %v2962_v58 = vor.u32 %v4272_v50, %v2959_v51  ;;  %v4093_v61 = vld [vmem:[%s6767_s1 + $0x9c8] sm:$0xf]  ;;  %v4550_v30 = vld [vmem:[%s6767_s1 + $0x994] sm:$0xf0] }
  0xca   :  { %v2078_v0 = vadd.f32 %v2077_v59, %v2065_v52  ;;  %v3965_v59 = vld [vmem:[%s6767_s1 + $0x8c8] sm:$0xf]  ;;  %v4546_v51 = vld [vmem:[%s6767_s1 + $0x974] sm:$0xf0] }
  0xcb   :  { %2316 = vmatpush.bf16.msra.mxu1 %v3582_v3  ;;  %2329 = vmatpush.bf16.msra.mxu2 %v3710_v4  ;;  %v4478_v3 = vld [vmem:[%s6767_s1 + $0x754] sm:$0xf0]  ;;  %v3390_v4 = vor.u32 %v4382_v57, %v3389_v56  ;;  %v2053_v6 = vpop.f32.mrf.mxu0  ;;  %v3982_v56 = vor.u32 %v4530_v46, %v3981_v45 }
  0xcc   :  { %2342 = vmatpush.bf16.msra.mxu3 %v3838_v8  ;;  %v2090_v1 = vpop.f32.mrf.mxu3  ;;  %v3646_v8 = vor.u32 %v4446_v63, %v3645_v62  ;;  %v3774_v13 = vor.u32 %v4478_v3, %v3773_v2  ;;  %v4558_v63 = vld [vmem:[%s6767_s1 + $0x9d4] sm:$0xf0]  ;;  %v4300_v2 = vld [vmem:[%s6767_s1 + $0x1cc] sm:$0xf]  ;;  %v3071_v3 = vld [vmem:[%s6767_s1 + $0x1d8] sm:$0xf0] }
  0xcd   :  { %2304 = vmatpush.bf16.msra.mxu0 %v3438_v14  ;;  %v5991_v5 = vadd.f32 %v2090_v1, %v2078_v0  ;;  %v2066_v12 = vpop.f32.mrf.mxu1  ;;  %v4410_v14 = vld [vmem:[%s6767_s1 + $0x534] sm:$0xf0]  ;;  %v4268_v0 = vld [vmem:[%s6767_s1 + $0xcc] sm:$0xf]  ;;  %v2943_v1 = vld [vmem:[%s6767_s1 + $0xd8] sm:$0xf0]  ;;  %v4094_v6 = vor.u32 %v4558_v63, %v4093_v61 }
  0xce   :  { %v3502_v28 = vor.u32 %v4410_v14, %v3501_v11  ;;  %v3074_v11 = vor.u32 %v4300_v2, %v3071_v3  ;;  %v4554_v12 = vld [vmem:[%s6767_s1 + $0x9b4] sm:$0xf0]  ;;  %v2927_v14 = vld [vmem:[%s6767_s1 + $0xb8] sm:$0xf0]  ;;  %v4029_v61 = vld [vmem:[%s6767_s1 + $0x948] sm:$0xf] }
  0xcf   :  { %2317 = vmatpush.bf16.msra.mxu1 %v3566_v15  ;;  %2330 = vmatpush.bf16.msra.mxu2 %v3694_v16  ;;  %v3629_v15 = vld [vmem:[%s6767_s1 + $0x628] sm:$0xf]  ;;  %v4442_v16 = vld [vmem:[%s6767_s1 + $0x634] sm:$0xf0]  ;;  %v4252_v63 = vld [vmem:[%s6767_s1 + $0x4c] sm:$0xf] }
  0xd0   :  { %2343 = vmatpush.bf16.msra.mxu3 %v3822_v25  ;;  %v3357_v25 = vld [vmem:[%s6767_s1 + $0x408] sm:$0xf]  ;;  %v3630_v29 = vor.u32 %v4442_v16, %v3629_v15  ;;  %v4296_v15 = vld [vmem:[%s6767_s1 + $0x1ac] sm:$0xf]  ;;  %v3055_v16 = vld [vmem:[%s6767_s1 + $0x1b8] sm:$0xf0] }
  0xd1   :  { %2305 = vmatpush.bf16.msra.mxu0 %v3422_v32  ;;  %v3613_v32 = vld [vmem:[%s6767_s1 + $0x608] sm:$0xf]  ;;  %v2079_v33 = vpop.f32.mrf.mxu2  ;;  %v3358_v48 = vor.u32 %v4374_v27, %v3357_v25  ;;  %v4518_v27 = vld [vmem:[%s6767_s1 + $0x894] sm:$0xf0]  ;;  %v4284_v2 = vld [vmem:[%s6767_s1 + $0x14c] sm:$0xf] }
  0xd2   :  { %v3933_v25 = vld [vmem:[%s6767_s1 + $0x888] sm:$0xf]  ;;  %v3007_v3 = vld [vmem:[%s6767_s1 + $0x158] sm:$0xf0] }
  0xd3   :  { %2318 = vmatpush.bf16.msra.mxu1 %v3550_v34  ;;  %2331 = vmatpush.bf16.msra.mxu2 %v3678_v35  ;;  %v3758_v34 = vor.u32 %v4474_v23, %v3757_v17  ;;  %v4438_v35 = vld [vmem:[%s6767_s1 + $0x614] sm:$0xf0]  ;;  %v4078_v23 = vor.u32 %v4554_v12, %v4077_v10  ;;  %v3885_v12 = vld [vmem:[%s6767_s1 + $0x828] sm:$0xf] }
  0xd4   :  { %2344 = vmatpush.bf16.msra.mxu3 %v3806_v47  ;;  %v2092_v39 = vpop.f32.mrf.mxu3  ;;  %v4109_v47 = vld [vmem:[%s6767_s1 + $0x9e8] sm:$0xf]  ;;  %v3614_v52 = vor.u32 %v4438_v35, %v3613_v32  ;;  %v2911_v32 = vld [vmem:[%s6767_s1 + $0x98] sm:$0xf0] }
  0xd5   :  { %2306 = vmatpush.bf16.msra.mxu0 %v3406_v53  ;;  %v4304_v53 = vld [vmem:[%s6767_s1 + $0x1ec] sm:$0xf]  ;;  %v4110_v57 = vor.u32 %v4562_v49, %v4109_v47  ;;  %v3039_v35 = vld [vmem:[%s6767_s1 + $0x198] sm:$0xf0]  ;;  %v2914_v46 = vor.u32 %v4260_v31, %v2911_v32  ;;  %v3917_v47 = vld [vmem:[%s6767_s1 + $0x868] sm:$0xf] }
  0xd6   :  { %v4045_v49 = vld [vmem:[%s6767_s1 + $0x968] sm:$0xf] }
  0xd7   :  { %2319 = vmatpush.bf16.msra.mxu1 %v3534_v54  ;;  %2332 = vmatpush.bf16.msra.mxu2 %v3662_v55  ;;  %v3087_v54 = vld [vmem:[%s6767_s1 + $0x1f8] sm:$0xf0]  ;;  %v3742_v55 = vor.u32 %v4470_v37, %v3741_v36  ;;  %v3934_v37 = vor.u32 %v4518_v27, %v3933_v25  ;;  %v4280_v25 = vld [vmem:[%s6767_s1 + $0x12c] sm:$0xf] }
  0xd8   :  { %2345 = vmatpush.bf16.msra.mxu3 %v3790_v60  ;;  %v4526_v60 = vld [vmem:[%s6767_s1 + $0x8d4] sm:$0xf0]  ;;  %v3090_v62 = vor.u32 %v4304_v53, %v3087_v54  ;;  %v4288_v53 = vld [vmem:[%s6767_s1 + $0x16c] sm:$0xf]  ;;  %v3023_v54 = vld [vmem:[%s6767_s1 + $0x178] sm:$0xf0] }
  0xd9   :  { %2307 = vmatpush.bf16.msra.mxu0 %v3390_v4  ;;  %v3966_v4 = vor.u32 %v4526_v60, %v3965_v59  ;;  %v3901_v59 = vld [vmem:[%s6767_s1 + $0x848] sm:$0xf]  ;;  %v4510_v60 = vld [vmem:[%s6767_s1 + $0x854] sm:$0xf0]  ;;  %v2991_v27 = vld [vmem:[%s6767_s1 + $0x138] sm:$0xf0] }
  0xdb   :  { %2320 = vmatpush.bf16.msra.mxu1 %v3518_v7  ;;  %2333 = vmatpush.bf16.msra.mxu2 %v3646_v8  ;;  %v2946_v7 = vor.u32 %v4268_v0, %v2943_v1  ;;  %v3949_v8 = vld [vmem:[%s6767_s1 + $0x8a8] sm:$0xf]  ;;  %v2879_v0 = vld [vmem:[%s6767_s1 + $0x58] sm:$0xf0] }
  0xdc   :  { %2346 = vmatpush.bf16.msra.mxu3 %v3774_v13  ;;  %v4264_v13 = vld [vmem:[%s6767_s1 + $0xac] sm:$0xf]  ;;  %v3950_v17 = vor.u32 %v4522_v9, %v3949_v8  ;;  %v3902_v8 = vor.u32 %v4510_v60, %v3901_v59 }
  0xdd   :  { %2308 = vmatpush.bf16.msra.mxu0 %v3374_v24  ;;  %v2930_v24 = vor.u32 %v4264_v13, %v2927_v14  ;;  %v4506_v13 = vld [vmem:[%s6767_s1 + $0x834] sm:$0xf0]  ;;  %v4013_v14 = vld [vmem:[%s6767_s1 + $0x928] sm:$0xf] }
  0xdf   :  { %2321 = vmatpush.bf16.msra.mxu1 %v3502_v28  ;;  %2334 = vmatpush.bf16.msra.mxu2 %v3630_v29  ;;  %v4061_v28 = vld [vmem:[%s6767_s1 + $0x988] sm:$0xf]  ;;  %v3058_v29 = vor.u32 %v4296_v15, %v3055_v16  ;;  %v3010_v16 = vor.u32 %v4284_v2, %v3007_v3  ;;  %v4396_v2 = vld [vmem:[%s6767_s1 + $0x4cc] sm:$0xf]  ;;  %v3455_v3 = vld [vmem:[%s6767_s1 + $0x4d8] sm:$0xf0] }
  0xe0   :  { %2347 = vmatpush.bf16.msra.mxu3 %v3758_v34  ;;  %v4292_v34 = vld [vmem:[%s6767_s1 + $0x18c] sm:$0xf]  ;;  %v4062_v45 = vor.u32 %v4550_v30, %v4061_v28  ;;  %v3886_v28 = vor.u32 %v4506_v13, %v3885_v12  ;;  %v4502_v30 = vld [vmem:[%s6767_s1 + $0x814] sm:$0xf0] }
  0xe1   :  { %2309 = vmatpush.bf16.msra.mxu0 %v3358_v48  ;;  %v2103_v33 = vpop.f32.mrf.mxu0  ;;  %v4514_v48 = vld [vmem:[%s6767_s1 + $0x874] sm:$0xf0]  ;;  %v4360_v12 = vld [vmem:[%s6767_s1 + $0x3ac] sm:$0xf] }
  0xe2   :  { %v2104_v36 = vadd.f32 %v2103_v33, %v5991_v5  ;;  %v3042_v5 = vor.u32 %v4292_v34, %v3039_v35  ;;  %v3997_v33 = vld [vmem:[%s6767_s1 + $0x908] sm:$0xf]  ;;  %v4534_v34 = vld [vmem:[%s6767_s1 + $0x914] sm:$0xf0]  ;;  %v4244_v35 = vld [vmem:[%s6767_s1 + $0xc] sm:$0xf] }
  0xe3   :  { %2322 = vmatpush.bf16.msra.mxu1 %v3486_v43  ;;  %2335 = vmatpush.bf16.msra.mxu2 %v3614_v52  ;;  %v2116_v39 = vpop.f32.mrf.mxu1  ;;  %v4256_v43 = vld [vmem:[%s6767_s1 + $0x6c] sm:$0xf]  ;;  %v2895_v52 = vld [vmem:[%s6767_s1 + $0x78] sm:$0xf0] }
  0xe4   :  { %2348 = vmatpush.bf16.msra.mxu3 %v3742_v55  ;;  %2310 = vmatmul.bf16.vlgmr.msra.gmra.mxu0 %v5085_v41  ;;  %v6151_v50 = vadd.f32 %v2116_v39, %v2104_v36  ;;  %v348_v55 = vperm.slane %v5759_v40, 1  ;;  %v3026_v40 = vor.u32 %v4288_v53, %v3023_v54  ;;  %v2994_v36 = vor.u32 %v4280_v25, %v2991_v27  ;;  %v4276_v39 = vld [vmem:[%s6767_s1 + $0x10c] sm:$0xf]  ;;  %v3471_v53 = vld [vmem:[%s6767_s1 + $0x4f8] sm:$0xf0] }
  0xe5   :  { %2354 = vmatpush.bf16.msrb.mxu0 %v3982_v56  ;;  %v3918_v56 = vor.u32 %v4514_v48, %v3917_v47  ;;  %v4336_v47 = vld [vmem:[%s6767_s1 + $0x2ec] sm:$0xf]  ;;  %v3215_v48 = vld [vmem:[%s6767_s1 + $0x2f8] sm:$0xf0]  ;;  %v3998_v54 = vor.u32 %v4534_v34, %v3997_v33 }
  0xe6   :  { %2336 = vmatmul.bf16.vlgmr.msra.gmra.mxu2 %v5077_v38  ;;  %2323 = vmatmul.bf16.vlgmr.msra.gmra.mxu1 %v5089_v44  ;;  %v3218_v59 = vor.u32 %v4336_v47, %v3215_v48  ;;  %v3423_v33 = vld [vmem:[%s6767_s1 + $0x498] sm:$0xf0]  ;;  %v4420_v34 = vld [vmem:[%s6767_s1 + $0x58c] sm:$0xf] }
  0xe7   :  { %2367 = vmatpush.bf16.msrb.mxu1 %v4110_v57  ;;  %2380 = vmatpush.bf16.msrb.mxu2 %v2962_v58  ;;  %v4046_v57 = vor.u32 %v4546_v51, %v4045_v49  ;;  %v2898_v58 = vor.u32 %v4256_v43, %v2895_v52  ;;  %v4368_v49 = vld [vmem:[%s6767_s1 + $0x3ec] sm:$0xf]  ;;  %v3343_v43 = vld [vmem:[%s6767_s1 + $0x3f8] sm:$0xf0] }
  0xe8   :  { %2393 = vmatpush.bf16.msrb.mxu3 %v3090_v62  ;;  %v4542_v62 = vld [vmem:[%s6767_s1 + $0x954] sm:$0xf0]  ;;  %v4400_v52 = vld [vmem:[%s6767_s1 + $0x4ec] sm:$0xf]  ;;  %v3346_v60 = vor.u32 %v4368_v49, %v3343_v43  ;;  %v3151_v47 = vld [vmem:[%s6767_s1 + $0x278] sm:$0xf0] }
  0xe9   :  { %2349 = vmatmul.bf16.vlgmr.msra.gmra.mxu3 %v5087_v42  ;;  %2355 = vmatpush.bf16.msrb.mxu0 %v3966_v4  ;;  %v2129_v1 = vpop.f32.mrf.mxu2  ;;  %v4030_v10 = vor.u32 %v4542_v62, %v4029_v61  ;;  %v3474_v61 = vor.u32 %v4400_v52, %v3471_v53  ;;  %v3199_v62 = vld [vmem:[%s6767_s1 + $0x2d8] sm:$0xf0]  ;;  %v4352_v48 = vld [vmem:[%s6767_s1 + $0x36c] sm:$0xf] }
  0xea   :  { %v2130_v4 = vadd.f32 %v2129_v1, %v348_v55  ;;  %v3327_v1 = vld [vmem:[%s6767_s1 + $0x3d8] sm:$0xf0]  ;;  %v4384_v52 = vld [vmem:[%s6767_s1 + $0x46c] sm:$0xf] }
  0xeb   :  { %2368 = vmatpush.bf16.msrb.mxu1 %v4094_v6  ;;  %2381 = vmatpush.bf16.msrb.mxu2 %v2946_v7  ;;  %v2105_v7 = vpop.f32.mrf.mxu0  ;;  %v2118_v9 = vpop.f32.mrf.mxu1  ;;  %v3279_v43 = vld [vmem:[%s6767_s1 + $0x378] sm:$0xf0] }
  0xec   :  { %2394 = vmatpush.bf16.msrb.mxu3 %v3074_v11  ;;  %v2142_v6 = vpop.f32.mrf.mxu3  ;;  %v2882_v11 = vor.u32 %v4252_v63, %v2879_v0  ;;  %v4364_v63 = vld [vmem:[%s6767_s1 + $0x3cc] sm:$0xf]  ;;  %v3458_v9 = vor.u32 %v4396_v2, %v3455_v3  ;;  %v3407_v53 = vld [vmem:[%s6767_s1 + $0x478] sm:$0xf0] }
  0xed   :  { %2356 = vmatpush.bf16.msrb.mxu0 %v3950_v17  ;;  %v6202_v15 = vadd.f32 %v2142_v6, %v2130_v4  ;;  %v4538_v17 = vld [vmem:[%s6767_s1 + $0x934] sm:$0xf0]  ;;  %v4428_v4 = vld [vmem:[%s6767_s1 + $0x5cc] sm:$0xf]  ;;  %v3583_v6 = vld [vmem:[%s6767_s1 + $0x5d8] sm:$0xf0] }
  0xee   :  { %v4014_v31 = vor.u32 %v4538_v17, %v4013_v14  ;;  %v3586_v13 = vor.u32 %v4428_v4, %v3583_v6  ;;  %v3311_v14 = vld [vmem:[%s6767_s1 + $0x3b8] sm:$0xf0]  ;;  %v4412_v3 = vld [vmem:[%s6767_s1 + $0x54c] sm:$0xf] }
  0xef   :  { %2369 = vmatpush.bf16.msrb.mxu1 %v4078_v23  ;;  %2382 = vmatpush.bf16.msrb.mxu2 %v2930_v24  ;;  %v4248_v23 = vld [vmem:[%s6767_s1 + $0x2c] sm:$0xf]  ;;  %v2863_v24 = vld [vmem:[%s6767_s1 + $0x38] sm:$0xf0]  ;;  %v3314_v27 = vor.u32 %v4360_v12, %v3311_v14 }
  0xf0   :  { %2395 = vmatpush.bf16.msrb.mxu3 %v3058_v29  ;;  %v3869_v29 = vld [vmem:[%s6767_s1 + $0x808] sm:$0xf]  ;;  %v2866_v32 = vor.u32 %v4248_v23, %v2863_v24  ;;  %v3439_v17 = vld [vmem:[%s6767_s1 + $0x4b8] sm:$0xf0]  ;;  %v4424_v23 = vld [vmem:[%s6767_s1 + $0x5ac] sm:$0xf] }
  0xf1   :  { %2357 = vmatpush.bf16.msrb.mxu0 %v3934_v37  ;;  %v2847_v37 = vld [vmem:[%s6767_s1 + $0x18] sm:$0xf0]  ;;  %v3870_v51 = vor.u32 %v4502_v30, %v3869_v29  ;;  %v4324_v29 = vld [vmem:[%s6767_s1 + $0x28c] sm:$0xf] }
  0xf2   :  { %v2850_v55 = vor.u32 %v4244_v35, %v2847_v37  ;;  %v3567_v24 = vld [vmem:[%s6767_s1 + $0x5b8] sm:$0xf0]  ;;  %v4344_v12 = vld [vmem:[%s6767_s1 + $0x32c] sm:$0xf] }
  0xf3   :  { %2370 = vmatpush.bf16.msrb.mxu1 %v4062_v45  ;;  %2383 = vmatpush.bf16.msrb.mxu2 %v2914_v46  ;;  %v2975_v45 = vld [vmem:[%s6767_s1 + $0x118] sm:$0xf0]  ;;  %v2131_v46 = vpop.f32.mrf.mxu2 }
  0xf4   :  { %2396 = vmatpush.bf16.msrb.mxu3 %v3042_v5  ;;  %v2144_v5 = vpop.f32.mrf.mxu3  ;;  %v3167_v30 = vld [vmem:[%s6767_s1 + $0x298] sm:$0xf0]  ;;  %v4320_v46 = vld [vmem:[%s6767_s1 + $0x26c] sm:$0xf] }
  0xf5   :  { %2358 = vmatpush.bf16.msrb.mxu0 %v3918_v56  ;;  %v4432_v56 = vld [vmem:[%s6767_s1 + $0x5ec] sm:$0xf]  ;;  %v3551_v35 = vld [vmem:[%s6767_s1 + $0x598] sm:$0xf0] }
  0xf6   :  { %v3519_v4 = vld [vmem:[%s6767_s1 + $0x558] sm:$0xf0] }
  0xf7   :  { %2371 = vmatpush.bf16.msrb.mxu1 %v4046_v57  ;;  %2384 = vmatpush.bf16.msrb.mxu2 %v2898_v58  ;;  %v3599_v57 = vld [vmem:[%s6767_s1 + $0x5f8] sm:$0xf0]  ;;  %v2978_v58 = vor.u32 %v4276_v39, %v2975_v45  ;;  %v3522_v14 = vor.u32 %v4412_v3, %v3519_v4  ;;  %v4556_v3 = vld [vmem:[%s6767_s1 + $0x9cc] sm:$0xf] }
  0xf8   :  { %2397 = vmatpush.bf16.msrb.mxu3 %v3026_v40  ;;  %v4332_v40 = vld [vmem:[%s6767_s1 + $0x2cc] sm:$0xf]  ;;  %v3602_v0 = vor.u32 %v4432_v56, %v3599_v57  ;;  %v3154_v56 = vor.u32 %v4320_v46, %v3151_v47  ;;  %v3282_v57 = vor.u32 %v4352_v48, %v3279_v43  ;;  %v3727_v46 = vld [vmem:[%s6767_s1 + $0x6f8] sm:$0xf0] }
  0xf9   :  { %2359 = vmatpush.bf16.msrb.mxu0 %v3902_v8  ;;  %v3202_v7 = vor.u32 %v4332_v40, %v3199_v62  ;;  %v3330_v8 = vor.u32 %v4364_v63, %v3327_v1  ;;  %v3263_v63 = vld [vmem:[%s6767_s1 + $0x358] sm:$0xf0]  ;;  %v4496_v47 = vld [vmem:[%s6767_s1 + $0x7ec] sm:$0xf] }
  0xfa   :  { %v3391_v1 = vld [vmem:[%s6767_s1 + $0x458] sm:$0xf0] }
  0xfb   :  { %2372 = vmatpush.bf16.msrb.mxu1 %v4030_v10  ;;  %2385 = vmatpush.bf16.msrb.mxu2 %v2882_v11  ;;  %v4328_v10 = vld [vmem:[%s6767_s1 + $0x2ac] sm:$0xf]  ;;  %v3183_v11 = vld [vmem:[%s6767_s1 + $0x2b8] sm:$0xf0] }
  0xfc   :  { %2398 = vmatpush.bf16.msrb.mxu3 %v3010_v16  ;;  %v4392_v16 = vld [vmem:[%s6767_s1 + $0x4ac] sm:$0xf]  ;;  %v3186_v25 = vor.u32 %v4328_v10, %v3183_v11  ;;  %v3119_v11 = vld [vmem:[%s6767_s1 + $0x238] sm:$0xf0] }
  0xfd   :  { %2360 = vmatpush.bf16.msrb.mxu0 %v3886_v28  ;;  %v3442_v28 = vor.u32 %v4392_v16, %v3439_v17  ;;  %v4312_v10 = vld [vmem:[%s6767_s1 + $0x22c] sm:$0xf]  ;;  %v3247_v16 = vld [vmem:[%s6767_s1 + $0x338] sm:$0xf0] }
  0xfe   :  { %v4376_v17 = vld [vmem:[%s6767_s1 + $0x42c] sm:$0xf]  ;;  %v4095_v4 = vld [vmem:[%s6767_s1 + $0x9d8] sm:$0xf0] }
  0xff   :  { %2373 = vmatpush.bf16.msrb.mxu1 %v4014_v31  ;;  %2386 = vmatpush.bf16.msrb.mxu2 %v2866_v32  ;;  %v3570_v31 = vor.u32 %v4424_v23, %v3567_v24  ;;  %v4388_v32 = vld [vmem:[%s6767_s1 + $0x48c] sm:$0xf]  ;;  %v3375_v23 = vld [vmem:[%s6767_s1 + $0x438] sm:$0xf0] }
 0x100   :  { %2399 = vmatpush.bf16.msrb.mxu3 %v2994_v36  ;;  %v3170_v36 = vor.u32 %v4324_v29, %v3167_v30  ;;  %v3426_v45 = vor.u32 %v4388_v32, %v3423_v33  ;;  %v4408_v24 = vld [vmem:[%s6767_s1 + $0x52c] sm:$0xf]  ;;  %v3103_v29 = vld [vmem:[%s6767_s1 + $0x218] sm:$0xf0]  ;;  %v3250_v30 = vor.u32 %v4344_v12, %v3247_v16  ;;  %v4098_v12 = vor.u32 %v4556_v3, %v4095_v4 }
 0x101   :  { %2361 = vmatpush.bf16.msrb.mxu0 %v3870_v51  ;;  %v2155_v37 = vpop.f32.mrf.mxu0  ;;  %v3554_v51 = vor.u32 %v4420_v34, %v3551_v35  ;;  %v4372_v32 = vld [vmem:[%s6767_s1 + $0x40c] sm:$0xf]  ;;  %v3359_v35 = vld [vmem:[%s6767_s1 + $0x418] sm:$0xf0] }
 0x102   :  { %v2156_v49 = vadd.f32 %v2155_v37, %v6202_v15  ;;  %v3535_v15 = vld [vmem:[%s6767_s1 + $0x578] sm:$0xf0] }
 0x103   :  { %2374 = vmatpush.bf16.msrb.mxu1 %v3998_v54  ;;  %2387 = vmatpush.bf16.msrb.mxu2 %v2850_v55  ;;  %v2168_v5 = vpop.f32.mrf.mxu1  ;;  %v4416_v54 = vld [vmem:[%s6767_s1 + $0x56c] sm:$0xf]  ;;  %v3487_v37 = vld [vmem:[%s6767_s1 + $0x518] sm:$0xf0] }
 0x104   :  { %2400 = vmatpush.bf16.msrb.mxu3 %v2978_v58  ;;  %2362 = vmatmul.bf16.vlgmr.msrb.gmra.mxu0 %v5275_v21  ;;  %v6368_v55 = vadd.f32 %v2168_v5, %v2156_v49  ;;  %v3410_v58 = vor.u32 %v4384_v52, %v3407_v53  ;;  %v3538_v62 = vor.u32 %v4416_v54, %v3535_v15  ;;  %v3855_v49 = vld [vmem:[%s6767_s1 + $0x7f8] sm:$0xf0]  ;;  %v4528_v5 = vld [vmem:[%s6767_s1 + $0x8ec] sm:$0xf] }
 0x105   :  { %2406 = vmatpush.bf16.msra.mxu0 %v3218_v59  ;;  %v4316_v59 = vld [vmem:[%s6767_s1 + $0x24c] sm:$0xf]  ;;  %v3362_v52 = vor.u32 %v4372_v32, %v3359_v35  ;;  %v4111_v54 = vld [vmem:[%s6767_s1 + $0x9f8] sm:$0xf0] }
 0x106   :  { %2375 = vmatmul.bf16.vlgmr.msrb.gmra.mxu1 %v5286_v26  ;;  %2388 = vmatmul.bf16.vlgmr.msrb.gmra.mxu2 %v4923_v19  ;;  %v4356_v19 = vld [vmem:[%s6767_s1 + $0x38c] sm:$0xf]  ;;  %v3951_v16 = vld [vmem:[%s6767_s1 + $0x8b8] sm:$0xf0] }
 0x107   :  { %2419 = vmatpush.bf16.msra.mxu1 %v3346_v60  ;;  %2432 = vmatpush.bf16.msra.mxu2 %v3474_v61  ;;  %v3135_v60 = vld [vmem:[%s6767_s1 + $0x258] sm:$0xf0]  ;;  %v4348_v61 = vld [vmem:[%s6767_s1 + $0x34c] sm:$0xf] }
 0x108   :  { %2445 = vmatpush.bf16.msra.mxu3 %v3602_v0  ;;  %v4380_v0 = vld [vmem:[%s6767_s1 + $0x44c] sm:$0xf]  ;;  %v3138_v6 = vor.u32 %v4316_v59, %v3135_v60  ;;  %v3711_v60 = vld [vmem:[%s6767_s1 + $0x6d8] sm:$0xf0] }
 0x109   :  { %2407 = vmatpush.bf16.msra.mxu0 %v3202_v7  ;;  %2401 = vmatmul.bf16.vlgmr.msrb.gmra.mxu3 %v4927_v22  ;;  %v3295_v22 = vld [vmem:[%s6767_s1 + $0x398] sm:$0xf0]  ;;  %v6379_v40 = vpop.f32.mrf.mxu2  ;;  %v2157_v7 = vpop.f32.mrf.mxu0  ;;  %v4560_v53 = vld [vmem:[%s6767_s1 + $0x9ec] sm:$0xf] }
 0x10a   :  { %v3298_v39 = vor.u32 %v4356_v19, %v3295_v22  ;;  %v3378_v19 = vor.u32 %v4376_v17, %v3375_v23  ;;  %v3231_v22 = vld [vmem:[%s6767_s1 + $0x318] sm:$0xf0]  ;;  %v4460_v59 = vld [vmem:[%s6767_s1 + $0x6cc] sm:$0xf] }
 0x10b   :  { %2420 = vmatpush.bf16.msra.mxu1 %v3330_v8  ;;  %2433 = vmatpush.bf16.msra.mxu2 %v3458_v9  ;;  %v3266_v8 = vor.u32 %v4348_v61, %v3263_v63  ;;  %v3394_v9 = vor.u32 %v4380_v0, %v3391_v1  ;;  %v4492_v61 = vld [vmem:[%s6767_s1 + $0x7cc] sm:$0xf]  ;;  %v3839_v63 = vld [vmem:[%s6767_s1 + $0x7d8] sm:$0xf0] }
 0x10c   :  { %2446 = vmatpush.bf16.msra.mxu3 %v3586_v13  ;;  %v6390_v2 = vpop.f32.mrf.mxu3  ;;  %v2170_v13 = vpop.f32.mrf.mxu1  ;;  %v4524_v0 = vld [vmem:[%s6767_s1 + $0x8cc] sm:$0xf]  ;;  %v3967_v1 = vld [vmem:[%s6767_s1 + $0x8d8] sm:$0xf0]  ;;  %v3842_v7 = vor.u32 %v4492_v61, %v3839_v63 }
 0x10d   :  { %2408 = vmatpush.bf16.msra.mxu0 %v3186_v25  ;;  %v3503_v25 = vld [vmem:[%s6767_s1 + $0x538] sm:$0xf0]  ;;  %v4552_v17 = vld [vmem:[%s6767_s1 + $0x9ac] sm:$0xf] }
 0x10e   :  { %v3506_v34 = vor.u32 %v4408_v24, %v3503_v25  ;;  %v3823_v13 = vld [vmem:[%s6767_s1 + $0x7b8] sm:$0xf0] }
 0x10f   :  { %2421 = vmatpush.bf16.msra.mxu1 %v3314_v27  ;;  %2434 = vmatpush.bf16.msra.mxu2 %v3442_v28  ;;  %v3122_v27 = vor.u32 %v4312_v10, %v3119_v11  ;;  %v4308_v28 = vld [vmem:[%s6767_s1 + $0x20c] sm:$0xf]  ;;  %v3695_v10 = vld [vmem:[%s6767_s1 + $0x6b8] sm:$0xf0] }
 0x110   :  { %2447 = vmatpush.bf16.msra.mxu3 %v3570_v31  ;;  %v4340_v31 = vld [vmem:[%s6767_s1 + $0x30c] sm:$0xf]  ;;  %v3106_v48 = vor.u32 %v4308_v28, %v3103_v29  ;;  %v3679_v28 = vld [vmem:[%s6767_s1 + $0x698] sm:$0xf0] }
 0x111   :  { %2409 = vmatpush.bf16.msra.mxu0 %v3170_v36  ;;  %v2183_v33 = vpop.f32.mrf.mxu2  ;;  %v4404_v36 = vld [vmem:[%s6767_s1 + $0x50c] sm:$0xf]  ;;  %v3234_v43 = vor.u32 %v4340_v31, %v3231_v22  ;;  %v4063_v22 = vld [vmem:[%s6767_s1 + $0x998] sm:$0xf0] }
 0x112   :  { %v3490_v15 = vor.u32 %v4404_v36, %v3487_v37  ;;  %v4488_v11 = vld [vmem:[%s6767_s1 + $0x7ac] sm:$0xf]  ;;  %v3663_v37 = vld [vmem:[%s6767_s1 + $0x678] sm:$0xf0] }
 0x113   :  { %2422 = vmatpush.bf16.msra.mxu1 %v3298_v39  ;;  %2435 = vmatpush.bf16.msra.mxu2 %v3426_v45  ;;  %v4464_v45 = vld [vmem:[%s6767_s1 + $0x6ec] sm:$0xf]  ;;  %v3826_v24 = vor.u32 %v4488_v11, %v3823_v13  ;;  %v4031_v63 = vld [vmem:[%s6767_s1 + $0x958] sm:$0xf0] }
 0x114   :  { %2448 = vmatpush.bf16.msra.mxu3 %v3554_v51  ;;  %v2196_v39 = vpop.f32.mrf.mxu3  ;;  %v3983_v51 = vld [vmem:[%s6767_s1 + $0x8f8] sm:$0xf0]  ;;  %v4516_v29 = vld [vmem:[%s6767_s1 + $0x88c] sm:$0xf] }
 0x115   :  { %2410 = vmatpush.bf16.msra.mxu0 %v3154_v56  ;;  %v3730_v56 = vor.u32 %v4464_v45, %v3727_v46  ;;  %v4548_v31 = vld [vmem:[%s6767_s1 + $0x98c] sm:$0xf]  ;;  %v3791_v46 = vld [vmem:[%s6767_s1 + $0x778] sm:$0xf0] }
 0x116   :  { %v4448_v36 = vld [vmem:[%s6767_s1 + $0x66c] sm:$0xf]  ;;  %v4066_v45 = vor.u32 %v4548_v31, %v4063_v22  ;;  %v3759_v11 = vld [vmem:[%s6767_s1 + $0x738] sm:$0xf0] }
 0x117   :  { %2423 = vmatpush.bf16.msra.mxu1 %v3282_v57  ;;  %2436 = vmatpush.bf16.msra.mxu2 %v3410_v58  ;;  %v3858_v57 = vor.u32 %v4496_v47, %v3855_v49  ;;  %v3986_v58 = vor.u32 %v4528_v5, %v3983_v51  ;;  %v4480_v39 = vld [vmem:[%s6767_s1 + $0x76c] sm:$0xf]  ;;  %v4047_v5 = vld [vmem:[%s6767_s1 + $0x978] sm:$0xf0]  ;;  %v3666_v51 = vor.u32 %v4448_v36, %v3663_v37 }
 0x118   :  { %2449 = vmatpush.bf16.msra.mxu3 %v3538_v62  ;;  %v4114_v62 = vor.u32 %v4560_v53, %v4111_v54  ;;  %v4512_v47 = vld [vmem:[%s6767_s1 + $0x86c] sm:$0xf]  ;;  %v3647_v54 = vld [vmem:[%s6767_s1 + $0x658] sm:$0xf0] }
 0x119   :  { %2411 = vmatpush.bf16.msra.mxu0 %v3138_v6  ;;  %v3714_v6 = vor.u32 %v4460_v59, %v3711_v60  ;;  %v4544_v49 = vld [vmem:[%s6767_s1 + $0x96c] sm:$0xf]  ;;  %v3903_v60 = vld [vmem:[%s6767_s1 + $0x858] sm:$0xf0] }
 0x11a   :  { %v4444_v53 = vld [vmem:[%s6767_s1 + $0x64c] sm:$0xf]  ;;  %v3887_v13 = vld [vmem:[%s6767_s1 + $0x838] sm:$0xf0] }
 0x11b   :  { %2424 = vmatpush.bf16.msra.mxu1 %v3266_v8  ;;  %2437 = vmatpush.bf16.msra.mxu2 %v3394_v9  ;;  %v3970_v8 = vor.u32 %v4524_v0, %v3967_v1  ;;  %v4456_v9 = vld [vmem:[%s6767_s1 + $0x6ac] sm:$0xf]  ;;  %v3650_v1 = vor.u32 %v4444_v53, %v3647_v54  ;;  %v3999_v31 = vld [vmem:[%s6767_s1 + $0x918] sm:$0xf0] }
 0x11c   :  { %2450 = vmatpush.bf16.msra.mxu3 %v3522_v14  ;;  %v4520_v14 = vld [vmem:[%s6767_s1 + $0x8ac] sm:$0xf]  ;;  %v3698_v23 = vor.u32 %v4456_v9, %v3695_v10  ;;  %v4570_v37 = vld [vmem:[%s6770_s3 + $0x38] sm:$0xff] }
 0x11d   :  { %2412 = vmatpush.bf16.msra.mxu0 %v3122_v27  ;;  %v3954_v25 = vor.u32 %v4520_v14, %v3951_v16  ;;  %v4452_v27 = vld [vmem:[%s6767_s1 + $0x68c] sm:$0xf]  ;;  %v4015_v16 = vld [vmem:[%s6767_s1 + $0x938] sm:$0xf0] }
 0x11e   :  { %v3682_v32 = vor.u32 %v4452_v27, %v3679_v28  ;;  %v4508_v59 = vld [vmem:[%s6767_s1 + $0x84c] sm:$0xf] }
 0x11f   :  { %2425 = vmatpush.bf16.msra.mxu1 %v3250_v30  ;;  %2438 = vmatpush.bf16.msra.mxu2 %v3378_v19  ;;  %v3935_v30 = vld [vmem:[%s6767_s1 + $0x898] sm:$0xf0]  ;;  %v4472_v9 = vld [vmem:[%s6767_s1 + $0x72c] sm:$0xf] }
 0x120   :  { %2451 = vmatpush.bf16.msra.mxu3 %v3506_v34  ;;  %v3938_v35 = vor.u32 %v4516_v29, %v3935_v30  ;;  %v4536_v14 = vld [vmem:[%s6767_s1 + $0x92c] sm:$0xf] }
 0x121   :  { %2413 = vmatpush.bf16.msra.mxu0 %v3106_v48  ;;  %v6540_v19 = vpop.f32.mrf.mxu0  ;;  %v3919_v48 = vld [vmem:[%s6767_s1 + $0x878] sm:$0xf0]  ;;  %v4468_v27 = vld [vmem:[%s6767_s1 + $0x70c] sm:$0xf]  ;;  %v4018_v28 = vor.u32 %v4536_v14, %v4015_v16 }
 0x122   :  { %v4532_v30 = vld [vmem:[%s6767_s1 + $0x90c] sm:$0xf] }
 0x123   :  { %2426 = vmatpush.bf16.msra.mxu1 %v3234_v43  ;;  %2439 = vmatpush.bf16.msra.mxu2 %v3362_v52  ;;  %v6548_v33 = vpop.f32.mrf.mxu1  ;;  %v3794_v43 = vor.u32 %v4480_v39, %v3791_v46  ;;  %v3922_v52 = vor.u32 %v4512_v47, %v3919_v48  ;;  %v4002_v36 = vor.u32 %v4532_v30, %v3999_v31  ;;  %v4578_v39 = vld [vmem:[%s6770_s3 + $0x78] sm:$0xff]  ;;  %v4577_v47 = vld [vmem:[%s6770_s3 + $0x70] sm:$0xff]  ;;  %v4568_v48 = vld [vmem:[%s6770_s3 + $0x28] sm:$0xff] }
 0x124   :  { %2452 = vmatpush.bf16.msra.mxu3 %v3490_v15  ;;  %2414 = vmatmul.bf16.vlgmr.msra.gmra.mxu0 %v4921_v18  ;;  %v4484_v18 = vld [vmem:[%s6767_s1 + $0x78c] sm:$0xf]  ;;  %v4586_v46 = vld [vmem:[%s6770_s3 + $0xb8] sm:$0xff] }
 0x125   :  { %2458 = vmatpush.bf16.msrb.mxu0 %v3730_v56  ;;  %v4476_v15 = vld [vmem:[%s6767_s1 + $0x74c] sm:$0xf]  ;;  %v4050_v56 = vor.u32 %v4544_v49, %v4047_v5  ;;  %v2182_v49 = vadd.f32 %v6379_v40, %v6368_v55  ;;  %v4566_v40 = vld [vmem:[%s6770_s3 + $0x18] sm:$0xff] }
 0x126   :  { %2440 = vmatmul.bf16.vlgmr.msra.gmra.mxu2 %v5085_v41  ;;  %v4079_v41 = vld [vmem:[%s6767_s1 + $0x9b8] sm:$0xf0]  ;;  %2427 = vmatmul.bf16.vlgmr.msra.gmra.mxu1 %v4925_v20  ;;  %v4580_v14 = vld [vmem:[%s6770_s3 + $0x88] sm:$0xff] }
 0x127   :  { %2471 = vmatpush.bf16.msrb.mxu1 %v3858_v57  ;;  %2484 = vmatpush.bf16.msrb.mxu2 %v3986_v58  ;;  %v3807_v20 = vld [vmem:[%s6767_s1 + $0x798] sm:$0xf0] }
 0x128   :  { %2497 = vmatpush.bf16.msrb.mxu3 %v4114_v62  ;;  %v3810_v34 = vor.u32 %v4484_v18, %v3807_v20  ;;  %v3775_v58 = vld [vmem:[%s6767_s1 + $0x758] sm:$0xf0]  ;;  %v4540_v62 = vld [vmem:[%s6767_s1 + $0x94c] sm:$0xf] }
 0x129   :  { %2453 = vmatmul.bf16.vlgmr.msra.gmra.mxu3 %v5089_v44  ;;  %2459 = vmatpush.bf16.msrb.mxu0 %v3714_v6  ;;  %v4082_v44 = vor.u32 %v4552_v17, %v4079_v41  ;;  %v6583_v57 = vpop.f32.mrf.mxu2  ;;  %v2209_v0 = vpop.f32.mrf.mxu0  ;;  %v3778_v4 = vor.u32 %v4476_v15, %v3775_v58  ;;  %v3906_v6 = vor.u32 %v4508_v59, %v3903_v60  ;;  %v3743_v18 = vld [vmem:[%s6767_s1 + $0x718] sm:$0xf0]  ;;  %v4584_v15 = vld [vmem:[%s6770_s3 + $0xa8] sm:$0xff]  ;;  %v4583_v58 = vld [vmem:[%s6770_s3 + $0xa0] sm:$0xff] }
 0x12a   :  { %v4034_v10 = vor.u32 %v4540_v62, %v4031_v63  ;;  %v3762_v41 = vor.u32 %v4472_v9, %v3759_v11  ;;  %v3871_v20 = vld [vmem:[%s6767_s1 + $0x818] sm:$0xf0]  ;;  %v4573_v59 = vld [vmem:[%s6770_s3 + $0x50] sm:$0xff]  ;;  %v4572_v0 = vld [vmem:[%s6770_s3 + $0x48] sm:$0xff] }
 0x12b   :  { %2472 = vmatpush.bf16.msrb.mxu1 %v3842_v7  ;;  %2485 = vmatpush.bf16.msrb.mxu2 %v3970_v8  ;;  %v2222_v3 = vpop.f32.mrf.mxu1  ;;  %v4440_v7 = vld [vmem:[%s6767_s1 + $0x62c] sm:$0xf]  ;;  %v3631_v8 = vld [vmem:[%s6767_s1 + $0x638] sm:$0xf0]  ;;  %v4596_v11 = vld [vmem:[%s6769_s2] sm:$0xf] }
 0x12c   :  { %2498 = vmatpush.bf16.msrb.mxu3 %v4098_v12  ;;  %v6594_v61 = vpop.f32.mrf.mxu3  ;;  %v4504_v12 = vld [vmem:[%s6767_s1 + $0x82c] sm:$0xf]  ;;  %v3634_v17 = vor.u32 %v4440_v7, %v3631_v8  ;;  %v4582_v63 = vld [vmem:[%s6770_s3 + $0x98] sm:$0xff]  ;;  %v2510_v7 = vmax.f32 %v6151_v50, 0.0  ;;  %v4571_v8 = vld [vmem:[%s6770_s3 + $0x40] sm:$0xff] }
 0x12d   :  { %2460 = vmatpush.bf16.msrb.mxu0 %v3698_v23  ;;  %v3890_v23 = vor.u32 %v4504_v12, %v3887_v13  ;;  %v349_v12 = vperm.slane %v4596_v11, 2 }
 0x12f   :  { %2473 = vmatpush.bf16.msrb.mxu1 %v3826_v24  ;;  %2486 = vmatpush.bf16.msrb.mxu2 %v3954_v25  ;;  %v4436_v24 = vld [vmem:[%s6767_s1 + $0x60c] sm:$0xf]  ;;  %v3615_v25 = vld [vmem:[%s6767_s1 + $0x618] sm:$0xf0] }
 0x130   :  { %2499 = vmatpush.bf16.msrb.mxu3 %v4082_v44  ;;  %v4500_v44 = vld [vmem:[%s6767_s1 + $0x80c] sm:$0xf] }
 0x131   :  { %2461 = vmatpush.bf16.msrb.mxu0 %v3682_v32  ;;  %v2235_v29 = vpop.f32.mrf.mxu2  ;;  %v3618_v32 = vor.u32 %v4436_v24, %v3615_v25 }
 0x133   :  { %2474 = vmatpush.bf16.msrb.mxu1 %v3810_v34  ;;  %2487 = vmatpush.bf16.msrb.mxu2 %v3938_v35  ;;  %v3746_v34 = vor.u32 %v4468_v27, %v3743_v18  ;;  %v3874_v35 = vor.u32 %v4500_v44, %v3871_v20 }
 0x134   :  { %2500 = vmatpush.bf16.msrb.mxu3 %v4066_v45  ;;  %v2248_v22 = vpop.f32.mrf.mxu3  ;;  %v4569_v45 = vld [vmem:[%s6770_s3 + $0x30] sm:$0xff] }
 0x135   :  { %2462 = vmatpush.bf16.msrb.mxu0 %v3666_v51  ;;  %v4585_v51 = vld [vmem:[%s6770_s3 + $0xb0] sm:$0xff] }
 0x137   :  { %2475 = vmatpush.bf16.msrb.mxu1 %v3794_v43  ;;  %2488 = vmatpush.bf16.msrb.mxu2 %v3922_v52  ;;  %v2195_v43 = vadd.f32 %v6390_v2, %v2182_v49  ;;  %v4574_v52 = vld [vmem:[%s6770_s3 + $0x58] sm:$0xff]  ;;  %v4593_v49 = vld [vmem:[%s6770_s3 + $0xf0] sm:$0xff] }
 0x138   :  { %2501 = vmatpush.bf16.msrb.mxu3 %v4050_v56 }
 0x139   :  { %2463 = vmatpush.bf16.msrb.mxu0 %v3650_v1  ;;  %v2208_v55 = vadd.f32 %v6540_v19, %v2195_v43  ;;  %v4565_v19 = vld [vmem:[%s6770_s3 + $0x10] sm:$0xff] }
 0x13a   :  { %v4589_v43 = vld [vmem:[%s6770_s3 + $0xd0] sm:$0xff] }
 0x13b   :  { %2476 = vmatpush.bf16.msrb.mxu1 %v3778_v4  ;;  %2489 = vmatpush.bf16.msrb.mxu2 %v3906_v6  ;;  %v2221_v2 = vadd.f32 %v6548_v33, %v2208_v55  ;;  %v4564_v33 = vld [vmem:[%s6770_s3 + $0x8] sm:$0xff]  ;;  %v4581_v6 = vld [vmem:[%s6770_s3 + $0x90] sm:$0xff] }
 0x13c   :  { %2502 = vmatpush.bf16.msrb.mxu3 %v4034_v10 }
 0x13d   :  { %2464 = vmatpush.bf16.msrb.mxu0 %v3634_v17  ;;  %v2234_v62 = vadd.f32 %v6583_v57, %v2221_v2  ;;  %v4563_v57 = vld [vmem:[%s6770_s3] sm:$0xff] }
 0x13f   :  { %2477 = vmatpush.bf16.msrb.mxu1 %v3762_v41  ;;  %2490 = vmatpush.bf16.msrb.mxu2 %v3890_v23  ;;  %v2247_v3 = vadd.f32 %v6594_v61, %v2234_v62  ;;  %v2514_v61 = vpack.c.bf16 %v2510_v7, %v2510_v7  ;;  %v4579_v41 = vld [vmem:[%s6770_s3 + $0x80] sm:$0xff] }
 0x140   :  { %2503 = vmatpush.bf16.msrb.mxu3 %v4018_v28 }
 0x141   :  { %2465 = vmatpush.bf16.msrb.mxu0 %v3618_v32  ;;  %v2511_v9 = vmax.f32 %v2247_v3, 0.0 }
 0x143   :  { %2478 = vmatpush.bf16.msrb.mxu1 %v3746_v34  ;;  %2491 = vmatpush.bf16.msrb.mxu2 %v3874_v35  ;;  %v2272_v5 = vpop.f32.mrf.mxu1  ;;  %v2515_v10 = vpack.c.bf16 %v2511_v9, %v2511_v9 }
 0x144   :  { %2504 = vmatpush.bf16.msrb.mxu3 %v4002_v36  ;;  %2466 = vmatmul.bf16.vlgmr.msrb.gmra.mxu0 %v5077_v38  ;;  %v4576_v38 = vld [vmem:[%s6770_s3 + $0x68] sm:$0xff] }
 0x145   :  { %2778 = vmatpush.bf16.msra.mxu0 %v4570_v37 }
 0x146   :  { %2479 = vmatmul.bf16.vlgmr.msrb.gmra.mxu1 %v5087_v42  ;;  %2492 = vmatmul.bf16.vlgmr.msrb.gmra.mxu2 %v5275_v21  ;;  %v4567_v42 = vld [vmem:[%s6770_s3 + $0x20] sm:$0xff]  ;;  %v2259_v21 = vpop.f32.mrf.mxu0 }
 0x147   :  { %2791 = vmatpush.bf16.msra.mxu1 %v4578_v39  ;;  %2505 = vmatmul.bf16.vlgmr.msrb.gmra.mxu3 %v5286_v26  ;;  %v4575_v26 = vld [vmem:[%s6770_s3 + $0x60] sm:$0xff]  ;;  %v2260_v13 = vadd.f32 %v2259_v21, %v349_v12 }
 0x148   :  { %2804 = vmatpush.bf16.msra.mxu2 %v4586_v46  ;;  %v4594_v46 = vld [vmem:[%s6770_s3 + $0xf8] sm:$0xff] }
 0x149   :  { %2779 = vmatpush.bf16.msra.mxu0 %v4569_v45  ;;  %v2285_v53 = vpop.f32.mrf.mxu2  ;;  %v2273_v17 = vadd.f32 %v2272_v5, %v2260_v13  ;;  %2817 = vmatpush.bf16.msra.mxu3 %v4594_v46  ;;  %v4591_v5 = vld [vmem:[%s6770_s3 + $0xe0] sm:$0xff] }
 0x14b   :  { %2792 = vmatpush.bf16.msra.mxu1 %v4577_v47  ;;  %v2274_v60 = vpop.f32.mrf.mxu1  ;;  %v2286_v25 = vadd.f32 %v2285_v53, %v2273_v17  ;;  %v4588_v53 = vld [vmem:[%s6770_s3 + $0xc8] sm:$0xff] }
 0x14c   :  { %2805 = vmatpush.bf16.msra.mxu2 %v4585_v51  ;;  %v2298_v54 = vpop.f32.mrf.mxu3  ;;  %v4590_v51 = vld [vmem:[%s6770_s3 + $0xd8] sm:$0xff] }
 0x14d   :  { %2780 = vmatpush.bf16.msra.mxu0 %v4568_v48  ;;  %v2299_v18 = vadd.f32 %v2298_v54, %v2286_v25  ;;  %2818 = vmatpush.bf16.msra.mxu3 %v4593_v49 }
 0x14e   :  { %v2261_v56 = vpop.f32.mrf.mxu0 }
 0x14f   :  { %2793 = vmatpush.bf16.msra.mxu1 %v4576_v38  ;;  %v4587_v56 = vld [vmem:[%s6770_s3 + $0xc0] sm:$0xff] }
 0x150   :  { %2806 = vmatpush.bf16.msra.mxu2 %v4584_v15 }
 0x151   :  { %2781 = vmatpush.bf16.msra.mxu0 %v4567_v42  ;;  %v2287_v1 = vpop.f32.mrf.mxu2  ;;  %v4592_v42 = vld [vmem:[%s6770_s3 + $0xe8] sm:$0xff] }
 0x152   :  { %2819 = vmatpush.bf16.msra.mxu3 %v4592_v42 }
 0x153   :  { %2794 = vmatpush.bf16.msra.mxu1 %v4575_v26 }
 0x154   :  { %2807 = vmatpush.bf16.msra.mxu2 %v4583_v58  ;;  %v2300_v4 = vpop.f32.mrf.mxu3 }
 0x155   :  { %2782 = vmatpush.bf16.msra.mxu0 %v4566_v40 }
 0x156   :  { %2820 = vmatpush.bf16.msra.mxu3 %v4591_v5 }
 0x157   :  { %2795 = vmatpush.bf16.msra.mxu1 %v4574_v52  ;;  %v350_v52 = vperm.slane %v4596_v11, 3 }
 0x158   :  { %2808 = vmatpush.bf16.msra.mxu2 %v4582_v63 }
 0x159   :  { %2783 = vmatpush.bf16.msra.mxu0 %v4565_v19 }
 0x15a   :  { %2821 = vmatpush.bf16.msra.mxu3 %v4590_v51 }
 0x15b   :  { %2796 = vmatpush.bf16.msra.mxu1 %v4573_v59 }
 0x15c   :  { %2809 = vmatpush.bf16.msra.mxu2 %v4581_v6 }
 0x15d   :  { %2784 = vmatpush.bf16.msra.mxu0 %v4564_v33 }
 0x15e   :  { %2822 = vmatpush.bf16.msra.mxu3 %v4589_v43 }
 0x15f   :  { %2797 = vmatpush.bf16.msra.mxu1 %v4572_v0 }
 0x160   :  { %2810 = vmatpush.bf16.msra.mxu2 %v4580_v14 }
 0x161   :  { %2785 = vmatpush.bf16.msra.mxu0 %v4563_v57  ;;  %v2311_v50 = vpop.f32.mrf.mxu0 }
 0x162   :  { %v2312_v29 = vadd.f32 %v2311_v50, %v2299_v18  ;;  %2823 = vmatpush.bf16.msra.mxu3 %v4588_v53 }
 0x163   :  { %2798 = vmatpush.bf16.msra.mxu1 %v4571_v8  ;;  %v2324_v16 = vpop.f32.mrf.mxu1 }
 0x164   :  { %2786 = vmatmul.bf16.vlgmr.msra.gmra.mxu0 %v2514_v61  ;;  %2811 = vmatpush.bf16.msra.mxu2 %v4579_v41  ;;  %v2325_v30 = vadd.f32 %v2324_v16, %v2312_v29  ;;  %v4595_v16 = vld [vmem:[%s6771_s4] ss:$0 sm:$0xff] }
 0x166   :  { %2799 = vmatmul.bf16.vlgmr.msra.gmra.mxu1 %v2515_v10  ;;  %2824 = vmatpush.bf16.msra.mxu3 %v4587_v56 }
 0x169   :  { %v2337_v23 = vpop.f32.mrf.mxu2  ;;  %v2313_v27 = vpop.f32.mrf.mxu0 }
 0x16a   :  { %v2338_v31 = vadd.f32 %v2337_v23, %v2325_v30 }
 0x16b   :  { %v2326_v28 = vpop.f32.mrf.mxu1 }
 0x16c   :  { %v2350_v24 = vpop.f32.mrf.mxu3 }
 0x16d   :  { %v2351_v22 = vadd.f32 %v2350_v24, %v2338_v31 }
 0x171   :  { %v2339_v44 = vpop.f32.mrf.mxu2 }
 0x174   :  { %v2352_v20 = vpop.f32.mrf.mxu3 }
 0x181   :  { %v2363_v32 = vpop.f32.mrf.mxu0 }
 0x182   :  { %v2364_v34 = vadd.f32 %v2363_v32, %v2351_v22 }
 0x183   :  { %v2376_v35 = vpop.f32.mrf.mxu1 }
 0x184   :  { %v2377_v36 = vadd.f32 %v2376_v35, %v2364_v34 }
 0x186   :  { %v2512_v37 = vmax.f32 %v2377_v36, 0.0 }
 0x188   :  { %v2516_v39 = vpack.c.bf16 %v2512_v37, %v2512_v37 }
 0x189   :  { %v2389_v45 = vpop.f32.mrf.mxu2  ;;  %v2365_v48 = vpop.f32.mrf.mxu0 }
 0x18a   :  { %2812 = vmatmul.bf16.vlgmr.msra.gmra.mxu2 %v2516_v39  ;;  %v2390_v2 = vadd.f32 %v2389_v45, %v350_v52 }
 0x18b   :  { %v2378_v38 = vpop.f32.mrf.mxu1 }
 0x18c   :  { %v2402_v47 = vpop.f32.mrf.mxu3 }
 0x18d   :  { %v2403_v59 = vadd.f32 %v2402_v47, %v2390_v2 }
 0x191   :  { %v2391_v21 = vpop.f32.mrf.mxu2 }
 0x194   :  { %v2404_v26 = vpop.f32.mrf.mxu3 }
 0x1a1   :  { %v2415_v55 = vpop.f32.mrf.mxu0 }
 0x1a2   :  { %v2416_v33 = vadd.f32 %v2415_v55, %v2403_v59 }
 0x1a3   :  { %v2428_v40 = vpop.f32.mrf.mxu1 }
 0x1a4   :  { %v2429_v63 = vadd.f32 %v2428_v40, %v2416_v33 }
 0x1a9   :  { %v2441_v54 = vpop.f32.mrf.mxu2  ;;  %v2417_v19 = vpop.f32.mrf.mxu0 }
 0x1aa   :  { %v2442_v0 = vadd.f32 %v2441_v54, %v2429_v63 }
 0x1ab   :  { %v2430_v58 = vpop.f32.mrf.mxu1 }
 0x1ac   :  { %v2454_v15 = vpop.f32.mrf.mxu3 }
 0x1ad   :  { %v2455_v1 = vadd.f32 %v2454_v15, %v2442_v0 }
 0x1b1   :  { %v2443_v60 = vpop.f32.mrf.mxu2 }
 0x1b4   :  { %v2456_v62 = vpop.f32.mrf.mxu3 }
 0x1c1   :  { %v2467_v3 = vpop.f32.mrf.mxu0 }
 0x1c2   :  { %v2468_v57 = vadd.f32 %v2467_v3, %v2455_v1 }
 0x1c3   :  { %v2480_v4 = vpop.f32.mrf.mxu1 }
 0x1c4   :  { %v2481_v6 = vadd.f32 %v2480_v4, %v2468_v57 }
 0x1c9   :  { %v2493_v7 = vpop.f32.mrf.mxu2  ;;  %v2469_v61 = vpop.f32.mrf.mxu0 }
 0x1ca   :  { %v2494_v8 = vadd.f32 %v2493_v7, %v2481_v6  ;;  %v2506_v9 = vpop.f32.mrf.mxu3 }
 0x1cb   :  { %v2482_v10 = vpop.f32.mrf.mxu1 }
 0x1cc   :  { %v2507_v11 = vadd.f32 %v2506_v9, %v2494_v8 }
 0x1ce   :  { %v2513_v12 = vmax.f32 %v2507_v11, 0.0 }
 0x1d0   :  { %v2517_v13 = vpack.c.bf16 %v2513_v12, %v2513_v12 }
 0x1d1   :  { %v2495_v50 = vpop.f32.mrf.mxu2 }
 0x1d2   :  { %v2508_v14 = vpop.f32.mrf.mxu3  ;;  %2825 = vmatmul.bf16.vlgmr.msra.gmra.mxu3 %v2517_v13 }
 0x1e1   :  { %v2787_v17 = vpop.f32.mrf.mxu0 }
 0x1e2   :  { %v2788_v41 = vadd.f32 %v4595_v16, %v2787_v17 }
 0x1e3   :  { %v2800_v23 = vpop.f32.mrf.mxu1 }
 0x1e4   :  { %v2801_v24 = vadd.f32 %v2800_v23, %v2788_v41 }
 0x1e9   :  { %v2789_v25 = vpop.f32.mrf.mxu0 }
 0x1eb   :  { %v2802_v27 = vpop.f32.mrf.mxu1 }
 0x20d   :  { %v2813_v28 = vpop.f32.mrf.mxu2 }
 0x20e   :  { %v2814_v18 = vadd.f32 %v2813_v28, %v2801_v24 }
 0x215   :  { %v2815_v44 = vpop.f32.mrf.mxu2 }
 0x255   :  { %v2826_v20 = vpop.f32.mrf.mxu3 }
 0x256   :  { %v2827_v29 = vadd.f32 %v2826_v20, %v2814_v18 }
 0x258   :  { %2830 = vst [vmem:[%s6772_s5] sm:$0xff] %v2827_v29 }
 0x25d   :  { %v2828_v30 = vpop.f32.mrf.mxu3 }

</bundles_post_ra>
